<compile_context>
chip_gen: v7x
topology: tpu7x:2x2x1
jax: 0.10.0
libtpu: 0.0.40
codegen_flags: <defaults>
</compile_context>

<pallas_src>
import jax
import jax.numpy as jnp
import numpy as np
from jax.experimental import pallas as pl
from jax.experimental.pallas import tpu as pltpu


def _make_disc_kernel(S, R):
    """Kernel for one block of P = R // S pedestrians (R = P*S rows)."""

    def kernel(x_ref,
               w1_ref, b1_ref, w2_ref, b2_ref, w3_ref, b3_ref,
               w4_ref, b4_ref,
               o_ref):
        # Hoisted per-pedestrian boundary masks, reused by all four layers.
        row = jax.lax.broadcasted_iota(jnp.int32, (R, 1), 0)
        pos = row % S
        not_first = pos != 0          # row is not the first timestep of its ped
        not_last = pos != (S - 1)     # row is not the last timestep of its ped

        def shift_cat(h):
            # (R, C) -> (R, 3C) = [h[t-1], h[t], h[t+1]] with per-ped zero pad.
            prev = jnp.where(not_first, pltpu.roll(h, shift=1, axis=0), 0.0)
            nxt = jnp.where(not_last, pltpu.roll(h, shift=R - 1, axis=0), 0.0)
            return jnp.concatenate([prev, h, nxt], axis=1)

        h = x_ref[...]  # (R, 2)

        # Layers 1-3: fused-tap MXU matmul (R, 3*Cin) @ (3*Cin, Cout) + ReLU.
        for w_ref, b_ref in ((w1_ref, b1_ref),
                             (w2_ref, b2_ref),
                             (w3_ref, b3_ref)):
            h = jnp.dot(shift_cat(h), w_ref[...],
                        preferred_element_type=jnp.float32) + b_ref[...]
            h = jnp.maximum(h, 0.0)

        # Layer 4 (Cout = 1): off the MXU -> elementwise multiply + lane reduce.
        hc = shift_cat(h)                                       # (R, 96)
        col = jnp.sum(hc * w4_ref[...], axis=1, keepdims=True) + b4_ref[...]
        # Lane-dense output row (last dim = R) instead of an (R, 1) column.
        o_ref[...] = col.reshape(1, 1, R)

    return kernel


def discriminator_forward(traj, traj_rel, seq_start_end, params):
    """Pallas implementation of Discriminator.forward.

    traj_rel: (seq_len, num_peds, 2) -> output (num_peds, seq_len)
    """
    del traj, seq_start_end  # unused by the torch forward as well
    S, N, C = traj_rel.shape
    assert C == 2
    w1, b1, w2, b2, w3, b3, w4, b4 = params

    # Pedestrians per grid step: target >= 512 rows (fills the MXU M dim on
    # v5e/v6e/v7x), multiple of 8 sublanes, never larger than padded N.
    P = max(8, pl.cdiv(512, S))
    P = ((P + 7) // 8) * 8
    P = min(P, ((N + 7) // 8) * 8)
    N_pad = pl.cdiv(N, P) * P
    num_blocks = N_pad // P
    R = P * S

    # NLC layout flattened to rows ordered (ped, time): (N_pad * S, 2).
    x = jnp.transpose(traj_rel, (1, 0, 2)).astype(jnp.float32)     # (N, S, 2)
    x = jnp.pad(x, ((0, N_pad - N), (0, 0), (0, 0))).reshape(N_pad * S, 2)

    # Stack the 3 conv taps so each layer is a single matmul.
    def stack(w):
        return w.astype(jnp.float32).reshape(-1, w.shape[-1])     # (3*Cin, Cout)

    w1s, w2s, w3s = stack(w1), stack(w2), stack(w3)
    w4v = w4.astype(jnp.float32).reshape(1, -1)                    # (1, 3*32)
    b1f, b2f, b3f, b4f = (b.astype(jnp.float32) for b in (b1, b2, b3, b4))

    def full_spec(a):
        nd = a.ndim
        return pl.BlockSpec(a.shape, lambda i, _nd=nd: (0,) * _nd)

    out = pl.pallas_call(
        _make_disc_kernel(S, R),
        out_shape=jax.ShapeDtypeStruct((num_blocks, 1, R), jnp.float32),
        grid_spec=pltpu.PrefetchScalarGridSpec(
            num_scalar_prefetch=0,
            grid=(num_blocks,),
            in_specs=[
                pl.BlockSpec((R, 2), lambda i: (i, 0)),
                full_spec(w1s), full_spec(b1f),
                full_spec(w2s), full_spec(b2f),
                full_spec(w3s), full_spec(b3f),
                full_spec(w4v), full_spec(b4f),
            ],
            out_specs=pl.BlockSpec((1, 1, R), lambda i: (i, 0, 0)),
        ),
        compiler_params=pltpu.CompilerParams(
            dimension_semantics=("parallel",)),
    )(x, w1s, b1f, w2s, b2f, w3s, b3f, w4v, b4f)

    # torch: output.squeeze() on (N, 1, S) -> (N, S)
    return out.reshape(N_pad, S)[:N]


def init_params(key, d_conv_dim=64, k=3):
    """Deterministic params. Weight layout (K, Cin, Cout), bias (1, Cout).

    (w_jax[k, cin, cout] == w_torch[cout, cin, k] for the torch Conv1d.)
    """
    dims = [(2, d_conv_dim // 2), (d_conv_dim // 2, d_conv_dim),
            (d_conv_dim, d_conv_dim // 2), (d_conv_dim // 2, 1)]
    params = []
    for cin, cout in dims:
        key, kw, kb = jax.random.split(key, 3)
        bound = 1.0 / float(np.sqrt(cin * k))
        w = jax.random.uniform(kw, (k, cin, cout), jnp.float32, -bound, bound)
        b = jax.random.uniform(kb, (1, cout), jnp.float32, -bound, bound)
        params += [w, b]
    return tuple(params)


def _reference_forward(traj_rel, params):
    """Pure-JAX reference (explicit zero padding) for correctness check."""
    x = jnp.transpose(traj_rel, (1, 0, 2)).astype(jnp.float32)  # (N, L, 2)
    ws = params[0::2]
    bs = params[1::2]
    for i, (w, b) in enumerate(zip(ws, bs)):
        L = x.shape[1]
        xp = jnp.pad(x, ((0, 0), (1, 1), (0, 0)))
        y = sum(jnp.einsum('nlc,cd->nld', xp[:, kk:kk + L, :], w[kk])
                for kk in range(3)) + b[None]
        x = jnp.maximum(y, 0.0) if i < 3 else y
    return x[:, :, 0]


if __name__ == "__main__":
    key = jax.random.PRNGKey(0)
    k_p, k_tr, k_trr = jax.random.split(key, 3)

    seq_len, num_peds = 8, 6
    params = init_params(k_p)
    traj = jax.random.normal(k_tr, (seq_len, num_peds, 2), jnp.float32)
    traj_rel = jax.random.normal(k_trr, (seq_len, num_peds, 2), jnp.float32)
    seq_start_end = jnp.array([[0, num_peds]], dtype=jnp.int32)  # unused

    out = discriminator_forward(traj, traj_rel, seq_start_end, params)
    out = jax.block_until_ready(out)

    ref = _reference_forward(traj_rel, params)
    assert out.shape == (num_peds, seq_len)
    np.testing.assert_allclose(np.asarray(out), np.asarray(ref),
                               rtol=1e-4, atol=1e-4)
    print("KERNEL_OK")
</pallas_src>

<mosaic_0001>
module attributes {stable_mosaic.version = 11 : i64} {
  func.func @kernel(%arg0: i32, %arg1: memref<64x2xf32, #tpu.memory_space<vmem>>, %arg2: memref<6x32xf32, #tpu.memory_space<vmem>>, %arg3: memref<1x32xf32, #tpu.memory_space<vmem>>, %arg4: memref<96x64xf32, #tpu.memory_space<vmem>>, %arg5: memref<1x64xf32, #tpu.memory_space<vmem>>, %arg6: memref<192x32xf32, #tpu.memory_space<vmem>>, %arg7: memref<1x32xf32, #tpu.memory_space<vmem>>, %arg8: memref<1x96xf32, #tpu.memory_space<vmem>>, %arg9: memref<1x1xf32, #tpu.memory_space<vmem>>, %arg10: memref<1x1x64xf32, #tpu.memory_space<vmem>>) attributes {dimension_semantics = [#tpu.dimension_semantics<parallel>], iteration_bounds = array<i64: 1>, scalar_prefetch = 0 : i64, scratch_operands = 0 : i64, tpu.core_type = #tpu.core_type<tc>, window_params = [{transform_indices = @transform_0, window_bounds = array<i64: 64, 2>}, {pipeline_mode = #tpu.pipeline_mode<synchronous>, transform_indices = @transform_1, window_bounds = array<i64: 6, 32>}, {pipeline_mode = #tpu.pipeline_mode<synchronous>, transform_indices = @transform_2, window_bounds = array<i64: 1, 32>}, {pipeline_mode = #tpu.pipeline_mode<synchronous>, transform_indices = @transform_3, window_bounds = array<i64: 96, 64>}, {pipeline_mode = #tpu.pipeline_mode<synchronous>, transform_indices = @transform_4, window_bounds = array<i64: 1, 64>}, {pipeline_mode = #tpu.pipeline_mode<synchronous>, transform_indices = @transform_5, window_bounds = array<i64: 192, 32>}, {pipeline_mode = #tpu.pipeline_mode<synchronous>, transform_indices = @transform_6, window_bounds = array<i64: 1, 32>}, {pipeline_mode = #tpu.pipeline_mode<synchronous>, transform_indices = @transform_7, window_bounds = array<i64: 1, 96>}, {pipeline_mode = #tpu.pipeline_mode<synchronous>, transform_indices = @transform_8, window_bounds = array<i64: 1, 1>}, {transform_indices = @transform_9, window_bounds = array<i64: 1, 1, 64>}]} {
    %0 = tpu.iota {dimensions = array<i32: 0>} : vector<64x1xi32>
    %c8_i32 = arith.constant 8 : i32
    %c0_i32 = arith.constant 0 : i32
    %1 = arith.cmpi eq, %c8_i32, %c0_i32 : i32
    %c1_i32 = arith.constant 1 : i32
    %2 = arith.select %1, %c1_i32, %c8_i32 : i32
    %3 = vector.broadcast %2 : i32 to vector<64x1xi32>
    %4 = arith.remsi %0, %3 : vector<64x1xi32>
    %c0_i32_0 = arith.constant 0 : i32
    %5 = vector.broadcast %c0_i32_0 : i32 to vector<64x1xi32>
    %6 = arith.cmpi ne, %4, %5 : vector<64x1xi32>
    %c0_i32_1 = arith.constant 0 : i32
    %7 = vector.broadcast %c0_i32_1 : i32 to vector<64x1xi32>
    %8 = arith.cmpi slt, %4, %7 : vector<64x1xi32>
    %c0_i32_2 = arith.constant 0 : i32
    %9 = arith.cmpi slt, %2, %c0_i32_2 : i32
    %10 = vector.broadcast %9 : i1 to vector<64x1xi1>
    %11 = vector.broadcast %10 : vector<64x1xi1> to vector<64x1xi1>
    %12 = arith.xori %8, %11 : vector<64x1xi1>
    %13 = arith.andi %12, %6 : vector<64x1xi1>
    %14 = vector.broadcast %2 : i32 to vector<64x1xi32>
    %15 = arith.addi %4, %14 : vector<64x1xi32>
    %16 = arith.select %13, %15, %4 : vector<64x1xi1>, vector<64x1xi32>
    %c0_i32_3 = arith.constant 0 : i32
    %17 = vector.broadcast %c0_i32_3 : i32 to vector<64x1xi32>
    %18 = arith.cmpi ne, %16, %17 : vector<64x1xi32>
    %c7_i32 = arith.constant 7 : i32
    %19 = vector.broadcast %c7_i32 : i32 to vector<64x1xi32>
    %20 = arith.cmpi ne, %16, %19 : vector<64x1xi32>
    %c0 = arith.constant 0 : index
    %c0_4 = arith.constant 0 : index
    %21 = vector.load %arg1[%c0, %c0_4] : memref<64x2xf32, #tpu.memory_space<vmem>>, vector<64x2xf32>
    %c1_i32_5 = arith.constant 1 : i32
    %22 = tpu.dynamic_rotate %21 by %c1_i32_5 dim 0 : vector<64x2xf32>, i32 -> vector<64x2xf32>
    %cst = arith.constant 0.000000e+00 : f32
    %23 = vector.shape_cast %18 : vector<64x1xi1> to vector<64x1xi1>
    %24 = vector.broadcast %23 : vector<64x1xi1> to vector<64x2xi1>
    %25 = vector.broadcast %cst : f32 to vector<64x2xf32>
    %26 = arith.select %24, %22, %25 : vector<64x2xi1>, vector<64x2xf32>
    %c63_i32 = arith.constant 63 : i32
    %27 = tpu.dynamic_rotate %21 by %c63_i32 dim 0 : vector<64x2xf32>, i32 -> vector<64x2xf32>
    %cst_6 = arith.constant 0.000000e+00 : f32
    %28 = vector.shape_cast %20 : vector<64x1xi1> to vector<64x1xi1>
    %29 = vector.broadcast %28 : vector<64x1xi1> to vector<64x2xi1>
    %30 = vector.broadcast %cst_6 : f32 to vector<64x2xf32>
    %31 = arith.select %29, %27, %30 : vector<64x2xi1>, vector<64x2xf32>
    %32 = tpu.concatenate %26, %21, %31 in 1 : vector<64x2xf32>, vector<64x2xf32>, vector<64x2xf32> -> vector<64x6xf32>
    %c0_7 = arith.constant 0 : index
    %c0_8 = arith.constant 0 : index
    %33 = vector.load %arg2[%c0_7, %c0_8] : memref<6x32xf32, #tpu.memory_space<vmem>>, vector<6x32xf32>
    %cst_9 = arith.constant dense<0.000000e+00> : vector<64x32xf32>
    %34 = tpu.matmul %32, %33, %cst_9 {dimension_numbers = #tpu.dot_dimension_numbers<[1], [0], [0], [1], [0, 0, 1, 1], [], []>} : vector<64x6xf32>, vector<6x32xf32>, vector<64x32xf32> -> vector<64x32xf32>
    %c0_10 = arith.constant 0 : index
    %c0_11 = arith.constant 0 : index
    %35 = vector.load %arg3[%c0_10, %c0_11] : memref<1x32xf32, #tpu.memory_space<vmem>>, vector<1x32xf32>
    %36 = vector.broadcast %35 : vector<1x32xf32> to vector<64x32xf32>
    %37 = arith.addf %34, %36 : vector<64x32xf32>
    %cst_12 = arith.constant 0.000000e+00 : f32
    %38 = vector.broadcast %cst_12 : f32 to vector<64x32xf32>
    %39 = arith.maximumf %37, %38 : vector<64x32xf32>
    %c1_i32_13 = arith.constant 1 : i32
    %40 = tpu.dynamic_rotate %39 by %c1_i32_13 dim 0 : vector<64x32xf32>, i32 -> vector<64x32xf32>
    %cst_14 = arith.constant 0.000000e+00 : f32
    %41 = vector.shape_cast %18 : vector<64x1xi1> to vector<64x1xi1>
    %42 = vector.broadcast %41 : vector<64x1xi1> to vector<64x32xi1>
    %43 = vector.broadcast %cst_14 : f32 to vector<64x32xf32>
    %44 = arith.select %42, %40, %43 : vector<64x32xi1>, vector<64x32xf32>
    %c63_i32_15 = arith.constant 63 : i32
    %45 = tpu.dynamic_rotate %39 by %c63_i32_15 dim 0 : vector<64x32xf32>, i32 -> vector<64x32xf32>
    %cst_16 = arith.constant 0.000000e+00 : f32
    %46 = vector.shape_cast %20 : vector<64x1xi1> to vector<64x1xi1>
    %47 = vector.broadcast %46 : vector<64x1xi1> to vector<64x32xi1>
    %48 = vector.broadcast %cst_16 : f32 to vector<64x32xf32>
    %49 = arith.select %47, %45, %48 : vector<64x32xi1>, vector<64x32xf32>
    %50 = tpu.concatenate %44, %39, %49 in 1 : vector<64x32xf32>, vector<64x32xf32>, vector<64x32xf32> -> vector<64x96xf32>
    %c0_17 = arith.constant 0 : index
    %c0_18 = arith.constant 0 : index
    %51 = vector.load %arg4[%c0_17, %c0_18] : memref<96x64xf32, #tpu.memory_space<vmem>>, vector<96x64xf32>
    %cst_19 = arith.constant dense<0.000000e+00> : vector<64x64xf32>
    %52 = tpu.matmul %50, %51, %cst_19 {dimension_numbers = #tpu.dot_dimension_numbers<[1], [0], [0], [1], [0, 0, 1, 1], [], []>} : vector<64x96xf32>, vector<96x64xf32>, vector<64x64xf32> -> vector<64x64xf32>
    %c0_20 = arith.constant 0 : index
    %c0_21 = arith.constant 0 : index
    %53 = vector.load %arg5[%c0_20, %c0_21] : memref<1x64xf32, #tpu.memory_space<vmem>>, vector<1x64xf32>
    %54 = vector.broadcast %53 : vector<1x64xf32> to vector<64x64xf32>
    %55 = arith.addf %52, %54 : vector<64x64xf32>
    %cst_22 = arith.constant 0.000000e+00 : f32
    %56 = vector.broadcast %cst_22 : f32 to vector<64x64xf32>
    %57 = arith.maximumf %55, %56 : vector<64x64xf32>
    %c1_i32_23 = arith.constant 1 : i32
    %58 = tpu.dynamic_rotate %57 by %c1_i32_23 dim 0 : vector<64x64xf32>, i32 -> vector<64x64xf32>
    %cst_24 = arith.constant 0.000000e+00 : f32
    %59 = vector.shape_cast %18 : vector<64x1xi1> to vector<64x1xi1>
    %60 = vector.broadcast %59 : vector<64x1xi1> to vector<64x64xi1>
    %61 = vector.broadcast %cst_24 : f32 to vector<64x64xf32>
    %62 = arith.select %60, %58, %61 : vector<64x64xi1>, vector<64x64xf32>
    %c63_i32_25 = arith.constant 63 : i32
    %63 = tpu.dynamic_rotate %57 by %c63_i32_25 dim 0 : vector<64x64xf32>, i32 -> vector<64x64xf32>
    %cst_26 = arith.constant 0.000000e+00 : f32
    %64 = vector.shape_cast %20 : vector<64x1xi1> to vector<64x1xi1>
    %65 = vector.broadcast %64 : vector<64x1xi1> to vector<64x64xi1>
    %66 = vector.broadcast %cst_26 : f32 to vector<64x64xf32>
    %67 = arith.select %65, %63, %66 : vector<64x64xi1>, vector<64x64xf32>
    %68 = tpu.concatenate %62, %57, %67 in 1 : vector<64x64xf32>, vector<64x64xf32>, vector<64x64xf32> -> vector<64x192xf32>
    %c0_27 = arith.constant 0 : index
    %c0_28 = arith.constant 0 : index
    %69 = vector.load %arg6[%c0_27, %c0_28] : memref<192x32xf32, #tpu.memory_space<vmem>>, vector<192x32xf32>
    %cst_29 = arith.constant dense<0.000000e+00> : vector<64x32xf32>
    %70 = tpu.matmul %68, %69, %cst_29 {dimension_numbers = #tpu.dot_dimension_numbers<[1], [0], [0], [1], [0, 0, 1, 1], [], []>} : vector<64x192xf32>, vector<192x32xf32>, vector<64x32xf32> -> vector<64x32xf32>
    %c0_30 = arith.constant 0 : index
    %c0_31 = arith.constant 0 : index
    %71 = vector.load %arg7[%c0_30, %c0_31] : memref<1x32xf32, #tpu.memory_space<vmem>>, vector<1x32xf32>
    %72 = vector.broadcast %71 : vector<1x32xf32> to vector<64x32xf32>
    %73 = arith.addf %70, %72 : vector<64x32xf32>
    %cst_32 = arith.constant 0.000000e+00 : f32
    %74 = vector.broadcast %cst_32 : f32 to vector<64x32xf32>
    %75 = arith.maximumf %73, %74 : vector<64x32xf32>
    %c1_i32_33 = arith.constant 1 : i32
    %76 = tpu.dynamic_rotate %75 by %c1_i32_33 dim 0 : vector<64x32xf32>, i32 -> vector<64x32xf32>
    %cst_34 = arith.constant 0.000000e+00 : f32
    %77 = vector.shape_cast %18 : vector<64x1xi1> to vector<64x1xi1>
    %78 = vector.broadcast %77 : vector<64x1xi1> to vector<64x32xi1>
    %79 = vector.broadcast %cst_34 : f32 to vector<64x32xf32>
    %80 = arith.select %78, %76, %79 : vector<64x32xi1>, vector<64x32xf32>
    %c63_i32_35 = arith.constant 63 : i32
    %81 = tpu.dynamic_rotate %75 by %c63_i32_35 dim 0 : vector<64x32xf32>, i32 -> vector<64x32xf32>
    %cst_36 = arith.constant 0.000000e+00 : f32
    %82 = vector.shape_cast %20 : vector<64x1xi1> to vector<64x1xi1>
    %83 = vector.broadcast %82 : vector<64x1xi1> to vector<64x32xi1>
    %84 = vector.broadcast %cst_36 : f32 to vector<64x32xf32>
    %85 = arith.select %83, %81, %84 : vector<64x32xi1>, vector<64x32xf32>
    %86 = tpu.concatenate %80, %75, %85 in 1 : vector<64x32xf32>, vector<64x32xf32>, vector<64x32xf32> -> vector<64x96xf32>
    %c0_37 = arith.constant 0 : index
    %c0_38 = arith.constant 0 : index
    %87 = vector.load %arg8[%c0_37, %c0_38] : memref<1x96xf32, #tpu.memory_space<vmem>>, vector<1x96xf32>
    %88 = vector.broadcast %87 : vector<1x96xf32> to vector<64x96xf32>
    %89 = arith.mulf %86, %88 : vector<64x96xf32>
    %cst_39 = arith.constant dense<0.000000e+00> : vector<64xf32>
    %90 = vector.multi_reduction <add>, %89, %cst_39 [1] : vector<64x96xf32> to vector<64xf32>
    %91 = vector.shape_cast %90 : vector<64xf32> to vector<64x1xf32>
    %c0_40 = arith.constant 0 : index
    %c0_41 = arith.constant 0 : index
    %92 = vector.load %arg9[%c0_40, %c0_41] : memref<1x1xf32, #tpu.memory_space<vmem>>, vector<1x1xf32>
    %93 = vector.broadcast %92 : vector<1x1xf32> to vector<64x1xf32>
    %94 = arith.addf %91, %93 : vector<64x1xf32>
    %95 = vector.shape_cast %94 : vector<64x1xf32> to vector<1x1x64xf32>
    %c0_42 = arith.constant 0 : index
    %c0_43 = arith.constant 0 : index
    %c0_44 = arith.constant 0 : index
    %96 = vector.load %arg10[%c0_42, %c0_43, %c0_44] : memref<1x1x64xf32, #tpu.memory_space<vmem>>, vector<1x1x64xf32>
    tpu.vector_store %arg10[%c0_42, %c0_43, %c0_44], %95 {strides = array<i32>} : memref<1x1x64xf32, #tpu.memory_space<vmem>>, vector<1x1x64xf32>,
    return
  }
  func.func @transform_0(%arg0: i32) -> (i32, i32) {
    %c0_i32 = arith.constant 0 : i32
    %c0_i32_0 = arith.constant 0 : i32
    return %arg0, %c0_i32 : i32, i32
  }
  func.func @transform_1(%arg0: i32) -> (i32, i32) {
    %c0_i32 = arith.constant 0 : i32
    %c0_i32_0 = arith.constant 0 : i32
    %c0_i32_1 = arith.constant 0 : i32
    return %c0_i32, %c0_i32_0 : i32, i32
  }
  func.func @transform_2(%arg0: i32) -> (i32, i32) {
    %c0_i32 = arith.constant 0 : i32
    %c0_i32_0 = arith.constant 0 : i32
    %c0_i32_1 = arith.constant 0 : i32
    return %c0_i32, %c0_i32_0 : i32, i32
  }
  func.func @transform_3(%arg0: i32) -> (i32, i32) {
    %c0_i32 = arith.constant 0 : i32
    %c0_i32_0 = arith.constant 0 : i32
    %c0_i32_1 = arith.constant 0 : i32
    return %c0_i32, %c0_i32_0 : i32, i32
  }
  func.func @transform_4(%arg0: i32) -> (i32, i32) {
    %c0_i32 = arith.constant 0 : i32
    %c0_i32_0 = arith.constant 0 : i32
    %c0_i32_1 = arith.constant 0 : i32
    return %c0_i32, %c0_i32_0 : i32, i32
  }
  func.func @transform_5(%arg0: i32) -> (i32, i32) {
    %c0_i32 = arith.constant 0 : i32
    %c0_i32_0 = arith.constant 0 : i32
    %c0_i32_1 = arith.constant 0 : i32
    return %c0_i32, %c0_i32_0 : i32, i32
  }
  func.func @transform_6(%arg0: i32) -> (i32, i32) {
    %c0_i32 = arith.constant 0 : i32
    %c0_i32_0 = arith.constant 0 : i32
    %c0_i32_1 = arith.constant 0 : i32
    return %c0_i32, %c0_i32_0 : i32, i32
  }
  func.func @transform_7(%arg0: i32) -> (i32, i32) {
    %c0_i32 = arith.constant 0 : i32
    %c0_i32_0 = arith.constant 0 : i32
    %c0_i32_1 = arith.constant 0 : i32
    return %c0_i32, %c0_i32_0 : i32, i32
  }
  func.func @transform_8(%arg0: i32) -> (i32, i32) {
    %c0_i32 = arith.constant 0 : i32
    %c0_i32_0 = arith.constant 0 : i32
    %c0_i32_1 = arith.constant 0 : i32
    return %c0_i32, %c0_i32_0 : i32, i32
  }
  func.func @transform_9(%arg0: i32) -> (i32, i32, i32) {
    %c0_i32 = arith.constant 0 : i32
    %c0_i32_0 = arith.constant 0 : i32
    %c0_i32_1 = arith.constant 0 : i32
    return %arg0, %c0_i32, %c0_i32_0 : i32, i32, i32
  }
}

</mosaic_0001>

<bundles_post_ra>
// kernel: tpu_custom_call.1
= control target key start
LH: loop header
LB: loop body
LE: loop exit
PB: predicated region body
PF: predicated region fallthrough
CT: control target
= control target key end

     0   :  { %s2403_s0 = inlined_call_operand.vmem [shape: f32[64,2], index: 0, kind: input, shape index: {}]   ;;  %s2404_s1 = inlined_call_operand.vmem [shape: f32[6,32], index: 1, kind: input, shape index: {}]   ;;  %s2405_s2 = inlined_call_operand.vmem [shape: f32[1,32], index: 2, kind: input, shape index: {}]   ;;  %s2406_s3 = inlined_call_operand.vmem [shape: f32[96,64], index: 3, kind: input, shape index: {}]   ;;  %s2407_s4 = inlined_call_operand.vmem [shape: f32[1,64], index: 4, kind: input, shape index: {}]   ;;  %s2408_s5 = inlined_call_operand.vmem [shape: f32[192,32], index: 5, kind: input, shape index: {}]   ;;  %s2409_s6 = inlined_call_operand.vmem [shape: f32[1,32], index: 6, kind: input, shape index: {}]   ;;  %s2410_s7 = inlined_call_operand.vmem [shape: f32[1,96], index: 7, kind: input, shape index: {}]   ;;  %s2411_s8 = inlined_call_operand.<no memory space> [shape: f32[1,1], index: 8, kind: input, shape index: {}]   ;;  %s2412_s9 = inlined_call_operand.hbm [shape: f32[1,1,64], index: 9, kind: output, shape index: {}]  }
   0x1   :  { %v14_v0 = vstv %s2411_s8 }
   0x2   :  { %15 = vst [vmem:[#allocation2] sm:$0x1] %v14_v0 }
   0x3   :  { %v1601_v1 = vld [vmem:[%s2403_s0] sm:$0xff]  ;;  %v1606_v2 = vld [vmem:[%s2403_s0 + $0x18] sm:$0xff]  ;;  %v1611_v3 = vld [vmem:[%s2403_s0 + $0x8] sm:$0xff]  ;;  %v35_v4 = vlaneseq  ;;  %s1538_s17 = smov 2  }
   0x4   :  { %254 = vrot.lane.b32.xlu0 %v1601_v1, %s1538_s17  ;;  %v205_v5 = vrot.slane %v1601_v1, 1  ;;  %260 = vrot.lane.b32.xlu1 %v1606_v2, %s1538_s17  ;;  %v1621_v6 = vld [vmem:[%s2403_s0 + $0x10] sm:$0xff]  ;;  %v206_v7 = vrot.slane %v1611_v3, 1  ;;  %v1630_v9 = vld [vmem:[%s2403_s0 + $0x20] sm:$0xff]  ;;  %v208_v10 = vrot.slane %v1606_v2, 1 }
   0x5   :  { %v1625_v8 = vshrl.u32 %v35_v4, 7  ;;  %v207_v11 = vrot.slane %v1621_v6, 1  ;;  %v209_v17 = vrot.slane %v1630_v9, 1 }
   0x7   :  { %v48_v12 = vand.u32 7, %v1625_v8  ;;  %vm2414_vm0 = vcmp.lt.s32.totalorder %v1625_v8, 7  ;;  %v1637_v13 = vadd.s32 8, %v1625_v8  ;;  %v1640_v14 = vadd.s32 16, %v1625_v8 }
   0x8   :  { %256 = vrot.lane.b32.xlu0 %v1611_v3, %s1538_s17  ;;  %v220_v15 = vsel %vm2414_vm0, %v205_v5, %v206_v7  ;;  %v1649_v16 = vadd.s32 24, %v1625_v8 }
   0x9   :  { %16 = vsyncpa [#allocation4], 0  ;;  %vm1654_vm1 = vcmp.ne.s32.totalorder %v48_v12, 7  ;;  %v2438_v18 = vmov 0  ;;  %v55_v19 = vand.u32 7, %v1637_v13  ;;  %v219_v20 = vsel %vm2414_vm0, %v206_v7, %v207_v11  ;;  %s1539_s21 = smov 4  }
   0xa   :  { %v2439_v18 = vsel %vm1654_vm1, 4294967295, %v2438_v18  ;;  %v62_v21 = vand.u32 7, %v1640_v14  ;;  %v238_v22 = vsel %vm1654_vm1, %v220_v15, 0.0  ;;  %v218_v23 = vsel %vm2414_vm0, %v207_v11, %v208_v10  ;;  %v161_v29 = vld [vmem:[%s2403_s0 + $0x28] sm:$0xff]  ;;  %v163_v34 = vld [vmem:[%s2403_s0 + $0x38] sm:$0xff]  ;;  %v162_v38 = vld [vmem:[%s2403_s0 + $0x30] sm:$0xff] }
   0xb   :  { %v69_v24 = vand.u32 7, %v1649_v16  ;;  %v1668_v25 = vadd.s32 32, %v1625_v8  ;;  %v164_v26 = vrot.slane %v1601_v1, 7  ;;  %286 = vrot.lane.b32.xlu1 %v238_v22, %s1539_s21  ;;  %vm1674_vm2 = vcmp.ne.s32.totalorder %v55_v19, 7  ;;  %v328_v52 = vld [vmem:[%s2404_s1] sm:$0x3f] }
   0xc   :  { %vm1680_vm3 = vcmp.ne.s32.totalorder %v62_v21, 7  ;;  %v167_v30 = vrot.slane %v1606_v2, 7  ;;  %v166_v31 = vrot.slane %v1621_v6, 7  ;;  %258 = vrot.lane.b32.xlu0 %v1621_v6, %s1538_s17  ;;  %v239_v32 = vsel %vm1674_vm2, %v219_v20, 0.0  ;;  %s1540_s30 = smov 32  }
   0xd   :  { %v1694_v33 = vadd.s32 40, %v1625_v8  ;;  %v240_v35 = vsel %vm1680_vm3, %v218_v23, 0.0  ;;  %vm1703_vm4 = vcmp.ne.s32.totalorder %v69_v24, 7  ;;  %v2444_v36 = vmov 0 }
   0xe   :  { %v2445_v36 = vsel %vm1703_vm4, 4294967295, %v2444_v36  ;;  %v217_v37 = vsel %vm2414_vm0, %v208_v10, %v209_v17  ;;  %v171_v39 = vrot.slane %v163_v34, 7  ;;  %v210_v40 = vrot.slane %v161_v29, 1 }
   0xf   :  { %v76_v41 = vand.u32 7, %v1668_v25  ;;  %v165_v42 = vrot.slane %v1611_v3, 7  ;;  %288 = vrot.lane.b32.xlu1 %v239_v32, %s1539_s21  ;;  %vm2413_vm5 = vcmp.lt.s32.totalorder %v1625_v8, 1  ;;  %v241_v43 = vsel %vm1703_vm4, %v217_v37, 0.0 }
  0x10   :  { %290 = vrot.lane.b32.xlu0 %v240_v35, %s1539_s21  ;;  %v83_v44 = vand.u32 7, %v1694_v33  ;;  %v211_v45 = vrot.slane %v162_v38, 1  ;;  %v180_v46 = vsel %vm2413_vm5, %v171_v39, %v164_v26  ;;  %v1724_v47 = vsel %vm2413_vm5, %v166_v31, %v167_v30 }
  0x11   :  { %vm1728_vm6 = vcmp.ne.s32.totalorder %v76_v41, 7  ;;  %v2446_v48 = vmov 0  ;;  %v216_v49 = vsel %vm2414_vm0, %v209_v17, %v210_v40  ;;  %v1735_v50 = vadd.s32 48, %v1625_v8 }
  0x12   :  { %v2447_v48 = vsel %vm1728_vm6, 4294967295, %v2446_v48  ;;  %v179_v51 = vsel %vm2413_vm5, %v164_v26, %v165_v42  ;;  %v169_v53 = vrot.slane %v161_v29, 7  ;;  %vm1747_vm7 = vcmp.ne.s32.totalorder %v83_v44, 7 }
  0x13   :  { %292 = vrot.lane.b32.xlu1 %v241_v43, %s1539_s21  ;;  %v215_v55 = vsel %vm2414_vm0, %v210_v40, %v211_v45  ;;  %v178_v56 = vsel %vm2413_vm5, %v165_v42, %v166_v31  ;;  %v242_v57 = vsel %vm1728_vm6, %v216_v49, 0.0  ;;  %v1758_v58 = vadd.s32 56, %v1625_v8 }
  0x14   :  { %262 = vrot.lane.b32.xlu0 %v1630_v9, %s1538_s17  ;;  %vm361_vm8 = vcmask 1045504   ;;  %v212_v59 = vrot.slane %v163_v34, 1  ;;  %v90_v60 = vand.u32 7, %v1735_v50  ;;  %v168_v61 = vrot.slane %v1630_v9, 7 }
  0x15   :  { %1366 = vmatprep.subr.msk.mxu0 %vm361_vm8, %v328_v52  ;;  %v170_v62 = vrot.slane %v162_v38, 7  ;;  %v243_v63 = vsel %vm1747_vm7, %v215_v55, 0.0  ;;  %v97_v7 = vand.u32 7, %v1758_v58  ;;  %v2450_v9 = vmov 0 }
  0x16   :  { %1367 = vmatpush3.msk.msra.mxu0 %vm361_vm8, %v328_v52  ;;  %v176_v0 = vsel %vm2413_vm5, %v167_v30, %v168_v61  ;;  %v175_v2 = vsel %vm2413_vm5, %v168_v61, %v169_v53  ;;  %vm1779_vm9 = vcmp.ne.s32.totalorder %v90_v60, 7  ;;  %v214_v10 = vsel %vm2414_vm0, %v211_v45, %v212_v59 }
  0x17   :  { %264 = vrot.lane.b32.xlu1 %v161_v29, %s1538_s17  ;;  %v1772_v3 = vsel %vm2413_vm5, %v169_v53, %v170_v62  ;;  %v1776_v6 = vsel %vm2413_vm5, %v170_v62, %v171_v39  ;;  %v2451_v9 = vsel %vm1779_vm9, 4294967295, %v2450_v9  ;;  %v244_v11 = vsel %vm1779_vm9, %v214_v10, 0.0  ;;  %v610_v10 = vld [vmem:[%s2406_s3 + $0x10] sm:$0xff] }
  0x18   :  { %294 = vrot.lane.b32.xlu0 %v242_v57, %s1539_s21  ;;  %vm1789_vm10 = vcmp.ne.s32.totalorder %v97_v7, 7  ;;  %v221_v17 = vsel %vm2414_vm0, %v212_v59, %v205_v5  ;;  %vm1804_vm11 = vcmp.ne.s32.totalorder %v48_v12, 0  ;;  %vm310_vm12 = vcmask 15360  }
  0x19   :  { %v245_v20 = vsel %vm1789_vm10, %v221_v17, 0.0  ;;  %v197_v5 = vsel %vm1804_vm11, %v180_v46, 0.0  ;;  %vm1812_vm13 = vcmp.ne.s32.totalorder %v62_v21, 0  ;;  %v2456_v29 = vmov 0  ;;  %v611_v17 = vld [vmem:[%s2406_s3 + $0x18] sm:$0xff] }
  0x1a   :  { %v2457_v29 = vsel %vm1812_vm13, 4294967295, %v2456_v29  ;;  %vm1818_vm14 = vcmp.ne.s32.totalorder %v55_v19, 0  ;;  %vm319_vm15 = vcmask 31744   ;;  %vm336_vm8 = vcmask 48128  }
  0x1b   :  { %296 = vrot.lane.b32.xlu1 %v243_v63, %s1539_s21  ;;  %v199_v32 = vsel %vm1812_vm13, %v178_v56, 0.0  ;;  %v198_v14 = vsel %vm1818_vm14, %v179_v51, 0.0  ;;  %vm1830_vm5 = vcmp.ne.s32.totalorder %v69_v24, 0  ;;  %v2460_v13 = vmov 0 }
  0x1c   :  { %266 = vrot.lane.b32.xlu0 %v162_v38, %s1538_s17  ;;  %v2461_v13 = vsel %vm1830_vm5, 4294967295, %v2460_v13  ;;  %v200_v38 = vsel %vm1830_vm5, %v1724_v47, 0.0  ;;  %vm1843_vm0 = vcmp.ne.s32.totalorder %v76_v41, 0  ;;  %v2462_v16 = vmov 0 }
  0x1d   :  { %v2463_v16 = vsel %vm1843_vm0, 4294967295, %v2462_v16  ;;  %v201_v45 = vsel %vm1843_vm0, %v176_v0, 0.0  ;;  %vm1857_vm5 = vcmp.ne.s32.totalorder %v83_v44, 0  ;;  %v2464_v25 = vmov 0 }
  0x1e   :  { %v2465_v25 = vsel %vm1857_vm5, 4294967295, %v2464_v25  ;;  %v202_v50 = vsel %vm1857_vm5, %v175_v2, 0.0  ;;  %vm1864_vm13 = vcmp.ne.s32.totalorder %v90_v60, 0  ;;  %v2466_v52 = vmov 0 }
  0x1f   :  { %268 = vrot.lane.b32.xlu1 %v163_v34, %s1538_s17  ;;  %v2467_v52 = vsel %vm1864_vm13, 4294967295, %v2466_v52  ;;  %v203_v55 = vsel %vm1864_vm13, %v1772_v3, 0.0  ;;  %vm1876_vm5 = vcmp.ne.s32.totalorder %v97_v7, 0  ;;  %v2468_v58 = vmov 0  ;;  %v608_v7 = vld [vmem:[%s2406_s3] sm:$0xff] }
  0x20   :  { %298 = vrot.lane.b32.xlu0 %v244_v11, %s1539_s21  ;;  %v2469_v58 = vsel %vm1876_vm5, 4294967295, %v2468_v58  ;;  %v204_v61 = vsel %vm1876_vm5, %v1776_v6, 0.0  ;;  %v609_v6 = vld [vmem:[%s2406_s3 + $0x8] sm:$0xff] }
  0x21   :  { %v1416_v11 = vpack.c.bf16 %v609_v6, %v608_v7 }
  0x23   :  { %300 = vrot.lane.b32.xlu1 %v245_v20, %s1539_s21  ;;  %v1420_v20 = vpack.c.bf16 %v611_v17, %v610_v10  ;;  %1417 = vmatprep.subr.bf16.mxu1 %v1416_v11 }
  0x24   :  { %1419 = vmatpush3.bf16.msra.mxu1 %v1416_v11 }
  0x25   :  { %1421 = vmatprep.subr.bf16.mxu1 %v1420_v20 }
  0x28   :  { %1423 = vmatpush3.bf16.msra.mxu1 %v1420_v20 }
  0x76   :  { %v255_v22 = vpop.permute.xlu0 %254  ;;  %v261_v1 = vpop.permute.xlu1 %260 }
  0x77   :  { %v311_v12 = vsel %vm310_vm12, %v197_v5, %v255_v22  ;;  %v314_v42 = vsel %vm310_vm12, %v200_v38, %v261_v1  ;;  %v612_v22 = vld [vmem:[%s2406_s3 + $0x20] sm:$0xff]  ;;  %v613_v1 = vld [vmem:[%s2406_s3 + $0x28] sm:$0xff] }
  0x78   :  { %v1424_v5 = vpack.c.bf16 %v613_v1, %v612_v22 }
  0x7a   :  { %v257_v26 = vpop.permute.xlu0 %256  ;;  %1425 = vmatprep.subr.bf16.mxu1 %v1424_v5 }
  0x7b   :  { %v312_v35 = vsel %vm310_vm12, %v198_v14, %v257_v26  ;;  %v614_v26 = vld [vmem:[%s2406_s3 + $0x30] sm:$0xff]  ;;  %1427 = vmatpush3.bf16.msra.mxu1 %v1424_v5  ;;  %v617_v14 = vld [vmem:[%s2406_s3 + $0x48] sm:$0xff] }
  0x7d   :  { %v287_v31 = vpop.permute.xlu1 %286 }
  0x7e   :  { %v259_v21 = vpop.permute.xlu0 %258  ;;  %v320_v34 = vsel %vm319_vm15, %v311_v12, %v287_v31  ;;  %v615_v12 = vld [vmem:[%s2406_s3 + $0x38] sm:$0xff] }
  0x7f   :  { %1368 = vmatprep.mubr.msk.f32.mxu0 %vm336_vm8, %v320_v34  ;;  %v313_v19 = vsel %vm310_vm12, %v199_v32, %v259_v21  ;;  %v1428_v31 = vpack.c.bf16 %v615_v12, %v614_v26  ;;  %v616_v32 = vld [vmem:[%s2406_s3 + $0x40] sm:$0xff]  ;;  %v618_v34 = vld [vmem:[%s2406_s3 + $0x50] sm:$0xff] }
  0x80   :  { %v1432_v21 = vpack.c.bf16 %v617_v14, %v616_v32 }
  0x81   :  { %v289_v37 = vpop.permute.xlu1 %288  ;;  %1429 = vmatprep.subr.bf16.mxu1 %v1428_v31 }
  0x82   :  { %v321_v39 = vsel %vm319_vm15, %v312_v35, %v289_v37  ;;  %v291_v40 = vpop.permute.xlu0 %290  ;;  %1431 = vmatpush3.bf16.msra.mxu1 %v1428_v31  ;;  %v1307_v37 = vld [vmem:[%s2405_s2] ss:$0 sm:$0xff]  ;;  %s1541_s2 = smov 64  }
  0x83   :  { %v322_v24 = vsel %vm319_vm15, %v313_v19, %v291_v40  ;;  %1369 = vmatmul.mubr.msk.f32.vlgmr.msra.gmra.mrb[0].mxu0 %vm336_vm8, %v321_v39  ;;  %1433 = vmatprep.subr.bf16.mxu1 %v1432_v21  ;;  %v619_v19 = vld [vmem:[%s2406_s3 + $0x58] sm:$0xff] }
  0x84   :  { %1371 = vmatprep.mubr.msk.f32.mxu0 %vm336_vm8, %v322_v24  ;;  %v1436_v35 = vpack.c.bf16 %v619_v19, %v618_v34 }
  0x85   :  { %v293_v43 = vpop.permute.xlu1 %292 }
  0x86   :  { %v323_v46 = vsel %vm319_vm15, %v314_v42, %v293_v43  ;;  %v263_v47 = vpop.permute.xlu0 %262  ;;  %1435 = vmatpush3.bf16.msra.mxu1 %v1432_v21 }
  0x87   :  { %1372 = vmatmul.mubr.msk.f32.gmra.mrb[2].mxu0 %vm336_vm8, %v323_v46  ;;  %v315_v41 = vsel %vm310_vm12, %v201_v45, %v263_v47  ;;  %1437 = vmatprep.subr.bf16.mxu1 %v1436_v35 }
  0x89   :  { %v265_v49 = vpop.permute.xlu1 %264 }
  0x8a   :  { %v295_v51 = vpop.permute.xlu0 %294  ;;  %v316_v33 = vsel %vm310_vm12, %v202_v50, %v265_v49  ;;  %1439 = vmatpush3.bf16.msra.mxu1 %v1436_v35 }
  0x8b   :  { %v324_v53 = vsel %vm319_vm15, %v315_v41, %v295_v51 }
  0x8c   :  { %1374 = vmatprep.mubr.msk.f32.mxu0 %vm336_vm8, %v324_v53 }
  0x8d   :  { %v297_v44 = vpop.permute.xlu1 %296 }
  0x8e   :  { %v325_v56 = vsel %vm319_vm15, %v316_v33, %v297_v44  ;;  %v267_v57 = vpop.permute.xlu0 %266 }
  0x8f   :  { %1375 = vmatmul.mubr.msk.f32.gmra.mrb[4].mxu0 %vm336_vm8, %v325_v56  ;;  %v317_v59 = vsel %vm310_vm12, %v203_v55, %v267_v57 }
  0x91   :  { %v269_v60 = vpop.permute.xlu1 %268 }
  0x92   :  { %v299_v62 = vpop.permute.xlu0 %298  ;;  %v318_v0 = vsel %vm310_vm12, %v204_v61, %v269_v60  ;;  %vm2470_vm12 = vcmp.lt.s32.totalorder %v1625_v8, 7 }
  0x93   :  { %v326_v63 = vsel %vm319_vm15, %v317_v59, %v299_v62 }
  0x94   :  { %1377 = vmatprep.mubr.msk.f32.mxu0 %vm336_vm8, %v326_v63 }
  0x95   :  { %v301_v2 = vpop.permute.xlu1 %300 }
  0x96   :  { %v327_v3 = vsel %vm319_vm15, %v318_v0, %v301_v2  ;;  %vm2471_vm15 = vcmp.lt.s32.totalorder %v1625_v8, 1 }
  0x97   :  { %1378 = vmatmul.mubr.msk.f32.gmra.mrb[6].mxu0 %vm336_vm8, %v327_v3  ;;  %vm2472_vm8 = vmmov %vm2470_vm12 }
  0x98   :  { %vm2474_vm5 = vmmov %vm2471_vm15 }
 0x156   :  { %v1370_v38 = vpop.f32.mrb[0].mxu0 }
 0x157   :  { %v437_v39 = vadd.f32 %v1370_v38, %v1307_v37  ;;  %v431_v40 = vpop.f32.mrb[1].mxu0 }
 0x158   :  { %v432_v24 = vadd.f32 %v1307_v37, %v431_v40 }
 0x159   :  { %v471_v42 = vmax.f32 %v437_v39, 0.0 }
 0x15a   :  { %v1928_v43 = vmax.f32 %v432_v24, 0.0  ;;  %v1373_v45 = vpop.f32.mrb[2].mxu0 }
 0x15b   :  { %v479_v46 = vrot.slane %v471_v42, 7  ;;  %v503_v47 = vrot.slane %v471_v42, 1  ;;  %v447_v41 = vadd.f32 %v1373_v45, %v1307_v37  ;;  %536 = vrot.lane.b32.xlu1 %v471_v42, %s1540_s30  ;;  %v441_v49 = vpop.f32.mrb[3].mxu0 }
 0x15c   :  { %v478_v50 = vrot.slane %v1928_v43, 7  ;;  %v502_v51 = vrot.slane %v1928_v43, 1  ;;  %v442_v53 = vadd.f32 %v1307_v37, %v441_v49  ;;  %534 = vrot.lane.b32.xlu0 %v1928_v43, %s1540_s30 }
 0x15d   :  { %v473_v33 = vmax.f32 %v447_v41, 0.0 }
 0x15e   :  { %v472_v44 = vmax.f32 %v442_v53, 0.0  ;;  %v516_v55 = vsel %vm2470_vm12, %v502_v51, %v503_v47  ;;  %v1939_v56 = vsel %vm2471_vm15, %v478_v50, %v479_v46  ;;  %vm2473_vm12 = vmmov %vm2472_vm8 }
 0x15f   :  { %v481_v57 = vrot.slane %v473_v33, 7  ;;  %v505_v59 = vrot.slane %v473_v33, 1  ;;  %v518_v60 = vsel %vm1654_vm1, %v516_v55, 0.0 }
 0x160   :  { %v480_v61 = vrot.slane %v472_v44, 7  ;;  %v504_v62 = vrot.slane %v472_v44, 1  ;;  %566 = vrot.lane.b32.xlu0 %v518_v60, %s1541_s2 }
 0x162   :  { %v1376_v63 = vpop.f32.mrb[4].mxu0  ;;  %v515_v0 = vsel %vm2472_vm8, %v503_v47, %v504_v62  ;;  %v514_v2 = vsel %vm2473_vm12, %v504_v62, %v505_v59  ;;  %v1950_v3 = vsel %vm2471_vm15, %v479_v46, %v480_v61  ;;  %v1954_v7 = vsel %vm2474_vm5, %v480_v61, %v481_v57  ;;  %vm2475_vm5 = vmmov %vm2472_vm8 }
 0x163   :  { %v457_v6 = vadd.f32 %v1376_v63, %v1307_v37  ;;  %v451_v10 = vpop.f32.mrb[5].mxu0  ;;  %v519_v11 = vsel %vm1674_vm2, %v515_v0, 0.0  ;;  %v520_v26 = vsel %vm1680_vm3, %v514_v2, 0.0  ;;  %vm2476_vm8 = vmmov %vm2475_vm5  ;;  %v495_v2 = vsel %vm1818_vm14, %v1939_v56, 0.0 }
 0x164   :  { %v452_v17 = vadd.f32 %v1307_v37, %v451_v10  ;;  %568 = vrot.lane.b32.xlu1 %v519_v11, %s1541_s2  ;;  %538 = vrot.lane.b32.xlu0 %v472_v44, %s1540_s30  ;;  %vm2477_vm12 = vmmov %vm2471_vm15 }
 0x165   :  { %v475_v20 = vmax.f32 %v457_v6, 0.0  ;;  %vm2478_vm15 = vmmov %vm2477_vm12 }
 0x166   :  { %v474_v22 = vmax.f32 %v452_v17, 0.0 }
 0x167   :  { %v483_v1 = vrot.slane %v475_v20, 7  ;;  %v507_v5 = vrot.slane %v475_v20, 1 }
 0x168   :  { %v482_v12 = vrot.slane %v474_v22, 7  ;;  %v506_v31 = vrot.slane %v474_v22, 1  ;;  %540 = vrot.lane.b32.xlu1 %v473_v33, %s1540_s30  ;;  %570 = vrot.lane.b32.xlu0 %v520_v26, %s1541_s2 }
 0x16a   :  { %v1379_v32 = vpop.f32.mrb[6].mxu0  ;;  %v513_v14 = vsel %vm2475_vm5, %v505_v59, %v506_v31  ;;  %v512_v21 = vsel %vm2476_vm8, %v506_v31, %v507_v5  ;;  %v489_v34 = vsel %vm2477_vm12, %v481_v57, %v482_v12  ;;  %v1972_v19 = vsel %vm2478_vm15, %v482_v12, %v483_v1  ;;  %vm2479_vm8 = vmmov %vm2477_vm12 }
 0x16b   :  { %v467_v35 = vadd.f32 %v1379_v32, %v1307_v37  ;;  %v461_v38 = vpop.f32.mrb[7].mxu0  ;;  %v521_v39 = vsel %vm1703_vm4, %v513_v14, 0.0  ;;  %v522_v46 = vsel %vm1728_vm6, %v512_v21, 0.0  ;;  %vm2480_vm12 = vmmov %vm2475_vm5 }
 0x16c   :  { %v462_v40 = vadd.f32 %v1307_v37, %v461_v38  ;;  %572 = vrot.lane.b32.xlu1 %v521_v39, %s1541_s2  ;;  %542 = vrot.lane.b32.xlu0 %v474_v22, %s1540_s30  ;;  %vm2481_vm15 = vmmov %vm2475_vm5 }
 0x16d   :  { %v477_v24 = vmax.f32 %v467_v35, 0.0  ;;  %vm2482_vm6 = vmmov %vm2479_vm8 }
 0x16e   :  { %v476_v42 = vmax.f32 %v462_v40, 0.0  ;;  %vm2483_vm4 = vmmov %vm2482_vm6 }
 0x16f   :  { %v485_v43 = vrot.slane %v477_v24, 7  ;;  %v509_v45 = vrot.slane %v477_v24, 1 }
 0x170   :  { %v484_v47 = vrot.slane %v476_v42, 7  ;;  %v508_v41 = vrot.slane %v476_v42, 1  ;;  %544 = vrot.lane.b32.xlu1 %v475_v20, %s1540_s30  ;;  %574 = vrot.lane.b32.xlu0 %v522_v46, %s1541_s2 }
 0x171   :  { %v517_v37 = vsel %vm2475_vm5, %v509_v45, %v502_v51  ;;  %v493_v49 = vsel %vm2479_vm8, %v485_v43, %v478_v50  ;;  %vm2432_vm5 = vcmask 523264   ;;  %vm2484_vm8 = vnez %v2457_v29 }
 0x172   :  { %v511_v53 = vsel %vm2480_vm12, %v507_v5, %v508_v41  ;;  %v510_v33 = vsel %vm2481_vm15, %v508_v41, %v509_v45  ;;  %v487_v55 = vsel %vm2482_vm6, %v483_v1, %v484_v47  ;;  %v486_v57 = vsel %vm2483_vm4, %v484_v47, %v485_v43 }
 0x173   :  { %v523_v44 = vsel %vm1747_vm7, %v511_v53, 0.0  ;;  %v524_v50 = vsel %vm1779_vm9, %v510_v33, 0.0  ;;  %v525_v51 = vsel %vm1789_vm10, %v517_v37, 0.0  ;;  %vm2430_vm6 = vcmask 261120   ;;  %v853_v33 = vld [vmem:[%s2408_s5] sm:$0xff] }
 0x174   :  { %576 = vrot.lane.b32.xlu1 %v523_v44, %s1541_s2  ;;  %546 = vrot.lane.b32.xlu0 %v476_v42, %s1540_s30  ;;  %v494_v60 = vsel %vm1804_vm11, %v493_v49, 0.0  ;;  %vm2429_vm4 = vcmask 785408   ;;  %v496_v20 = vsel %vm2484_vm8, %v1950_v3, 0.0  ;;  %vm2485_vm12 = vnez %v2461_v13  ;;  %v854_v44 = vld [vmem:[%s2408_s5 + $0x8] sm:$0xff] }
 0x175   :  { %v497_v56 = vsel %vm2485_vm12, %v1954_v7, 0.0  ;;  %v498_v3 = vsel %vm1843_vm0, %v489_v34, 0.0  ;;  %vm2486_vm15 = vnez %v2465_v25  ;;  %v500_v34 = vsel %vm1864_vm13, %v487_v55, 0.0  ;;  %v855_v55 = vld [vmem:[%s2408_s5 + $0x10] sm:$0xff] }
 0x176   :  { %v499_v7 = vsel %vm2486_vm15, %v1972_v19, 0.0  ;;  %vm2487_vm9 = vnez %v2469_v58 }
 0x177   :  { %v501_v19 = vsel %vm2487_vm9, %v486_v57, 0.0  ;;  %v1542_v57 = vmov 0.0|0.0   ;;  %vm2500_vm9 = vcmask 523264  }
 0x178   :  { %548 = vrot.lane.b32.xlu1 %v477_v24, %s1540_s30  ;;  %578 = vrot.lane.b32.xlu0 %v524_v50, %s1541_s2  ;;  %v1441_v50 = vpack.c.bf16 %v854_v44, %v853_v33 }
 0x179   :  { %1440 = vmatprep.subr.bf16.mxu0 %v1542_v57  ;;  %1476 = vmatprep.subr.bf16.mxu1 %v1542_v57 }
 0x17a   :  { %1442 = vmatpush1.bf16.msra.mxu0 %v1441_v50 }
 0x17b   :  { %1443 = vmatprep.subr.bf16.mxu0 %v1542_v57 }
 0x17c   :  { %580 = vrot.lane.b32.xlu1 %v525_v51, %s1541_s2  ;;  %v856_v51 = vld [vmem:[%s2408_s5 + $0x18] sm:$0xff] }
 0x1cd   :  { %v537_v61 = vpop.permute.xlu1 %536 }
 0x1ce   :  { %v535_v59 = vpop.permute.xlu0 %534  ;;  %v592_v6 = vsel %vm2430_vm6, %v495_v2, %v537_v61  ;;  %v858_v61 = vld [vmem:[%s2408_s5 + $0x28] sm:$0xff] }
 0x1cf   :  { %v591_v62 = vsel %vm2430_vm6, %v494_v60, %v535_v59  ;;  %v1444_v59 = vpack.c.bf16 %v856_v51, %v855_v55  ;;  %v857_v60 = vld [vmem:[%s2408_s5 + $0x20] sm:$0xff] }
 0x1d1   :  { %1445 = vmatpush1.bf16.msra.mxu0 %v1444_v59 }
 0x1d2   :  { %v567_v63 = vpop.permute.xlu0 %566  ;;  %1446 = vmatprep.subr.bf16.mxu0 %v1542_v57 }
 0x1d3   :  { %v600_v0 = vsel %vm2432_vm5, %v591_v62, %v567_v63  ;;  %v1447_v62 = vpack.c.bf16 %v858_v61, %v857_v60  ;;  %v859_v63 = vld [vmem:[%s2408_s5 + $0x30] sm:$0xff] }
 0x1d4   :  { %1404 = vmatprep.mubr.msk.f32.mxu1 %vm2429_vm4, %v600_v0  ;;  %v860_v0 = vld [vmem:[%s2408_s5 + $0x38] sm:$0xff] }
 0x1d5   :  { %1448 = vmatpush1.bf16.msra.mxu0 %v1447_v62  ;;  %v1450_v2 = vpack.c.bf16 %v860_v0, %v859_v63 }
 0x1d6   :  { %v569_v10 = vpop.permute.xlu1 %568  ;;  %v539_v11 = vpop.permute.xlu0 %538  ;;  %1449 = vmatprep.subr.bf16.mxu0 %v1542_v57 }
 0x1d7   :  { %v601_v17 = vsel %vm2432_vm5, %v592_v6, %v569_v10  ;;  %v593_v22 = vsel %vm2430_vm6, %v496_v20, %v539_v11  ;;  %v861_v6 = vld [vmem:[%s2408_s5 + $0x40] sm:$0xff]  ;;  %v862_v10 = vld [vmem:[%s2408_s5 + $0x48] sm:$0xff]  ;;  %v864_v20 = vld [vmem:[%s2408_s5 + $0x58] sm:$0xff] }
 0x1d8   :  { %1405 = vmatmul.mubr.msk.f32.vlgmr.msra.gmra.mrb[0].mxu1 %vm2429_vm4, %v601_v17  ;;  %v1453_v11 = vpack.c.bf16 %v862_v10, %v861_v6  ;;  %v863_v17 = vld [vmem:[%s2408_s5 + $0x50] sm:$0xff] }
 0x1d9   :  { %1488 = vmatpush1.bf16.msra.mxu1 %v1441_v50  ;;  %1451 = vmatpush1.bf16.msra.mxu0 %v1450_v2 }
 0x1da   :  { %v541_v1 = vpop.permute.xlu1 %540  ;;  %v571_v5 = vpop.permute.xlu0 %570  ;;  %1477 = vmatprep.subr.bf16.mxu1 %v1542_v57  ;;  %1452 = vmatprep.subr.bf16.mxu0 %v1542_v57 }
 0x1db   :  { %v602_v26 = vsel %vm2432_vm5, %v593_v22, %v571_v5  ;;  %v594_v12 = vsel %vm2430_vm6, %v497_v56, %v541_v1  ;;  %v1456_v22 = vpack.c.bf16 %v864_v20, %v863_v17  ;;  %v865_v1 = vld [vmem:[%s2408_s5 + $0x60] sm:$0xff]  ;;  %v866_v5 = vld [vmem:[%s2408_s5 + $0x68] sm:$0xff]  ;;  %v867_v56 = vld [vmem:[%s2408_s5 + $0x70] sm:$0xff] }
 0x1dc   :  { %1407 = vmatprep.mubr.msk.f32.mxu1 %vm2429_vm4, %v602_v26  ;;  %v1459_v26 = vpack.c.bf16 %v866_v5, %v865_v1 }
 0x1dd   :  { %1489 = vmatpush1.bf16.msra.mxu1 %v1444_v59  ;;  %1454 = vmatpush1.bf16.msra.mxu0 %v1453_v11 }
 0x1de   :  { %v573_v31 = vpop.permute.xlu1 %572  ;;  %v543_v32 = vpop.permute.xlu0 %542  ;;  %1478 = vmatprep.subr.bf16.mxu1 %v1542_v57  ;;  %1455 = vmatprep.subr.bf16.mxu0 %v1542_v57 }
 0x1df   :  { %v603_v14 = vsel %vm2432_vm5, %v594_v12, %v573_v31  ;;  %v595_v21 = vsel %vm2430_vm6, %v498_v3, %v543_v32  ;;  %v868_v12 = vld [vmem:[%s2408_s5 + $0x78] sm:$0xff]  ;;  %v869_v32 = vld [vmem:[%s2408_s5 + $0x80] sm:$0xff] }
 0x1e0   :  { %1408 = vmatmul.mubr.msk.f32.gmra.mrb[2].mxu1 %vm2429_vm4, %v603_v14  ;;  %v1462_v31 = vpack.c.bf16 %v868_v12, %v867_v56  ;;  %v870_v14 = vld [vmem:[%s2408_s5 + $0x88] sm:$0xff] }
 0x1e1   :  { %1490 = vmatpush1.bf16.msra.mxu1 %v1447_v62  ;;  %1457 = vmatpush1.bf16.msra.mxu0 %v1456_v22  ;;  %v1465_v3 = vpack.c.bf16 %v870_v14, %v869_v32 }
 0x1e2   :  { %v545_v35 = vpop.permute.xlu1 %544  ;;  %v575_v38 = vpop.permute.xlu0 %574  ;;  %1479 = vmatprep.subr.bf16.mxu1 %v1542_v57  ;;  %1458 = vmatprep.subr.bf16.mxu0 %v1542_v57 }
 0x1e3   :  { %v604_v39 = vsel %vm2432_vm5, %v595_v21, %v575_v38  ;;  %v596_v40 = vsel %vm2430_vm6, %v499_v7, %v545_v35  ;;  %v871_v21 = vld [vmem:[%s2408_s5 + $0x90] sm:$0xff]  ;;  %v872_v35 = vld [vmem:[%s2408_s5 + $0x98] sm:$0xff]  ;;  %v874_v7 = vld [vmem:[%s2408_s5 + $0xa8] sm:$0xff] }
 0x1e4   :  { %1410 = vmatprep.mubr.msk.f32.mxu1 %vm2429_vm4, %v604_v39  ;;  %v1468_v38 = vpack.c.bf16 %v872_v35, %v871_v21  ;;  %v873_v39 = vld [vmem:[%s2408_s5 + $0xa0] sm:$0xff] }
 0x1e5   :  { %1491 = vmatpush1.bf16.msra.mxu1 %v1450_v2  ;;  %1460 = vmatpush1.bf16.msra.mxu0 %v1459_v26 }
 0x1e6   :  { %v577_v24 = vpop.permute.xlu1 %576  ;;  %v547_v42 = vpop.permute.xlu0 %546  ;;  %1480 = vmatprep.subr.bf16.mxu1 %v1542_v57  ;;  %1461 = vmatprep.subr.bf16.mxu0 %v1542_v57 }
 0x1e7   :  { %v605_v43 = vsel %vm2432_vm5, %v596_v40, %v577_v24  ;;  %v597_v45 = vsel %vm2430_vm6, %v500_v34, %v547_v42  ;;  %v1471_v40 = vpack.c.bf16 %v874_v7, %v873_v39  ;;  %v875_v24 = vld [vmem:[%s2408_s5 + $0xb0] sm:$0xff]  ;;  %v876_v42 = vld [vmem:[%s2408_s5 + $0xb8] sm:$0xff]  ;;  %v1317_v34 = vld [vmem:[%s2407_s4] ss:$0 sm:$0xff] }
 0x1e8   :  { %1411 = vmatmul.mubr.msk.f32.gmra.mrb[4].mxu1 %vm2429_vm4, %v605_v43  ;;  %v1474_v43 = vpack.c.bf16 %v876_v42, %v875_v24 }
 0x1e9   :  { %1492 = vmatpush1.bf16.msra.mxu1 %v1453_v11  ;;  %1463 = vmatpush1.bf16.msra.mxu0 %v1462_v31 }
 0x1ea   :  { %v549_v46 = vpop.permute.xlu1 %548  ;;  %v579_v47 = vpop.permute.xlu0 %578  ;;  %1481 = vmatprep.subr.bf16.mxu1 %v1542_v57  ;;  %1464 = vmatprep.subr.bf16.mxu0 %v1542_v57 }
 0x1eb   :  { %v606_v41 = vsel %vm2432_vm5, %v597_v45, %v579_v47  ;;  %v598_v37 = vsel %vm2430_vm6, %v501_v19, %v549_v46  ;;  %vm2489_vm6 = vcmp.lt.s32.totalorder %v1625_v8, 1 }
 0x1ec   :  { %1413 = vmatprep.mubr.msk.f32.mxu1 %vm2429_vm4, %v606_v41 }
 0x1ed   :  { %1493 = vmatpush1.bf16.msra.mxu1 %v1456_v22  ;;  %1466 = vmatpush1.bf16.msra.mxu0 %v1465_v3 }
 0x1ee   :  { %v581_v49 = vpop.permute.xlu1 %580  ;;  %1482 = vmatprep.subr.bf16.mxu1 %v1542_v57  ;;  %1467 = vmatprep.subr.bf16.mxu0 %v1542_v57 }
 0x1ef   :  { %v607_v53 = vsel %vm2432_vm5, %v598_v37, %v581_v49 }
 0x1f0   :  { %1414 = vmatmul.mubr.msk.f32.gmra.mrb[6].mxu1 %vm2429_vm4, %v607_v53  ;;  %vm2488_vm4 = vcmp.lt.s32.totalorder %v1625_v8, 7 }
 0x1f1   :  { %1494 = vmatpush1.bf16.msra.mxu1 %v1459_v26  ;;  %1469 = vmatpush1.bf16.msra.mxu0 %v1468_v38 }
 0x1f2   :  { %1483 = vmatprep.subr.bf16.mxu1 %v1542_v57  ;;  %1470 = vmatprep.subr.bf16.mxu0 %v1542_v57 }
 0x1f5   :  { %1495 = vmatpush1.bf16.msra.mxu1 %v1462_v31  ;;  %1472 = vmatpush1.bf16.msra.mxu0 %v1471_v40 }
 0x1f6   :  { %1484 = vmatprep.subr.bf16.mxu1 %v1542_v57  ;;  %1473 = vmatprep.subr.bf16.mxu0 %v1542_v57 }
 0x1f9   :  { %1496 = vmatpush1.bf16.msra.mxu1 %v1465_v3  ;;  %1475 = vmatpush1.bf16.msra.mxu0 %v1474_v43 }
 0x1fa   :  { %1485 = vmatprep.subr.bf16.mxu1 %v1542_v57 }
 0x1fd   :  { %1497 = vmatpush1.bf16.msra.mxu1 %v1468_v38 }
 0x1fe   :  { %1486 = vmatprep.subr.bf16.mxu1 %v1542_v57 }
 0x201   :  { %1498 = vmatpush1.bf16.msra.mxu1 %v1471_v40 }
 0x202   :  { %1487 = vmatprep.subr.bf16.mxu1 %v1542_v57 }
 0x205   :  { %1499 = vmatpush1.bf16.msra.mxu1 %v1474_v43 }
 0x2ab   :  { %v1406_v45 = vpop.f32.mrb[0].mxu1 }
 0x2ac   :  { %v724_v46 = vadd.f32 %v1406_v45, %v1317_v34  ;;  %v718_v47 = vpop.f32.mrb[1].mxu1 }
 0x2ad   :  { %v719_v41 = vadd.f32 %v1317_v34, %v718_v47 }
 0x2ae   :  { %v758_v19 = vmax.f32 %v724_v46, 0.0 }
 0x2af   :  { %v757_v37 = vmax.f32 %v719_v41, 0.0 }
 0x2b0   :  { %v766_v49 = vrot.slane %v758_v19, 7  ;;  %v790_v53 = vrot.slane %v758_v19, 1  ;;  %823 = vrot.lane.b32.xlu1 %v758_v19, %s1541_s2 }
 0x2b1   :  { %v765_v33 = vrot.slane %v757_v37, 7  ;;  %v789_v44 = vrot.slane %v757_v37, 1  ;;  %821 = vrot.lane.b32.xlu0 %v757_v37, %s1541_s2 }
 0x2b3   :  { %v1409_v55 = vpop.f32.mrb[2].mxu1  ;;  %v803_v57 = vsel %vm2488_vm4, %v789_v44, %v790_v53  ;;  %v2154_v50 = vsel %vm2489_vm6, %v765_v33, %v766_v49  ;;  %vm2490_vm6 = vmmov %vm2488_vm4 }
 0x2b4   :  { %v734_v51 = vadd.f32 %v1409_v55, %v1317_v34  ;;  %v728_v59 = vpop.f32.mrb[3].mxu1  ;;  %v805_v60 = vsel %vm1654_vm1, %v803_v57, 0.0  ;;  %vm2491_vm1 = vcmp.lt.s32.totalorder %v1625_v8, 1 }
 0x2b5   :  { %v729_v61 = vadd.f32 %v1317_v34, %v728_v59  ;;  %1327 = vmatprep.mubr.msk.f32.mxu0 %vm2432_vm5, %v805_v60  ;;  %vm2492_vm5 = vmmov %vm2491_vm1 }
 0x2b6   :  { %v760_v62 = vmax.f32 %v734_v51, 0.0 }
 0x2b7   :  { %v759_v63 = vmax.f32 %v729_v61, 0.0 }
 0x2b8   :  { %v768_v0 = vrot.slane %v760_v62, 7  ;;  %v792_v2 = vrot.slane %v760_v62, 1  ;;  %827 = vrot.lane.b32.xlu1 %v760_v62, %s1541_s2 }
 0x2b9   :  { %v767_v6 = vrot.slane %v759_v63, 7  ;;  %v791_v10 = vrot.slane %v759_v63, 1  ;;  %825 = vrot.lane.b32.xlu0 %v759_v63, %s1541_s2 }
 0x2bb   :  { %v1412_v11 = vpop.f32.mrb[4].mxu1  ;;  %v802_v17 = vsel %vm2490_vm6, %v790_v53, %v791_v10  ;;  %v801_v20 = vsel %vm2488_vm4, %v791_v10, %v792_v2  ;;  %v778_v22 = vsel %vm2491_vm1, %v766_v49, %v767_v6  ;;  %v777_v1 = vsel %vm2492_vm5, %v767_v6, %v768_v0  ;;  %vm2493_vm6 = vmmov %vm2488_vm4 }
 0x2bc   :  { %v744_v5 = vadd.f32 %v1412_v11, %v1317_v34  ;;  %v738_v26 = vpop.f32.mrb[5].mxu1  ;;  %vm2494_vm1 = vmmov %vm2488_vm4  ;;  %v806_v63 = vsel %vm1674_vm2, %v802_v17, 0.0  ;;  %v807_v6 = vsel %vm1680_vm3, %v801_v20, 0.0  ;;  %v783_v11 = vsel %vm2484_vm8, %v778_v22, 0.0 }
 0x2bd   :  { %v739_v56 = vadd.f32 %v1317_v34, %v738_v26  ;;  %vm2495_vm4 = vmmov %vm2492_vm5 }
 0x2be   :  { %v762_v12 = vmax.f32 %v744_v5, 0.0 }
 0x2bf   :  { %v761_v31 = vmax.f32 %v739_v56, 0.0 }
 0x2c0   :  { %v770_v32 = vrot.slane %v762_v12, 7  ;;  %v794_v14 = vrot.slane %v762_v12, 1  ;;  %831 = vrot.lane.b32.xlu1 %v762_v12, %s1541_s2 }
 0x2c1   :  { %v769_v3 = vrot.slane %v761_v31, 7  ;;  %v793_v21 = vrot.slane %v761_v31, 1  ;;  %829 = vrot.lane.b32.xlu0 %v761_v31, %s1541_s2 }
 0x2c3   :  { %v1415_v35 = vpop.f32.mrb[6].mxu1  ;;  %v800_v38 = vsel %vm2493_vm6, %v792_v2, %v793_v21  ;;  %v799_v39 = vsel %vm2494_vm1, %v793_v21, %v794_v14  ;;  %v776_v7 = vsel %vm2492_vm5, %v768_v0, %v769_v3  ;;  %v775_v40 = vsel %vm2495_vm4, %v769_v3, %v770_v32  ;;  %vm2496_vm6 = vmmov %vm2494_vm1 }
 0x2c4   :  { %v754_v24 = vadd.f32 %v1415_v35, %v1317_v34  ;;  %v748_v42 = vpop.f32.mrb[7].mxu1  ;;  %vm2497_vm1 = vmmov %vm2495_vm4  ;;  %v782_v0 = vsel %vm1818_vm14, %v2154_v50, 0.0  ;;  %v784_v50 = vsel %vm2485_vm12, %v777_v1, 0.0  ;;  %v785_v12 = vsel %vm1843_vm0, %v776_v7, 0.0 }
 0x2c5   :  { %v749_v43 = vadd.f32 %v1317_v34, %v748_v42  ;;  %vm2498_vm5 = vmmov %vm2496_vm6  ;;  %v786_v1 = vsel %vm2486_vm15, %v775_v40, 0.0  ;;  %vm2517_vm0 = vnez %v2469_v58 }
 0x2c6   :  { %v764_v45 = vmax.f32 %v754_v24, 0.0  ;;  %vm2499_vm4 = vmmov %vm2498_vm5 }
 0x2c7   :  { %v763_v46 = vmax.f32 %v749_v43, 0.0  ;;  %vm2501_vm13 = vmmov %vm2497_vm1  ;;  %v1326_v43 = vld [vmem:[%s2409_s6] ss:$0 sm:$0xff] }
 0x2c8   :  { %v772_v47 = vrot.slane %v764_v45, 7  ;;  %v796_v41 = vrot.slane %v764_v45, 1 }
 0x2c9   :  { %v771_v19 = vrot.slane %v763_v46, 7  ;;  %v795_v37 = vrot.slane %v763_v46, 1  ;;  %v1507_v49 = vpack.i.bf16 %v764_v45, %v763_v46 }
 0x2ca   :  { %v804_v53 = vsel %vm2496_vm6, %v796_v41, %v789_v44  ;;  %v780_v55 = vsel %vm2497_vm1, %v772_v47, %v765_v33  ;;  %vm2502_vm6 = vmmov %vm2497_vm1 }
 0x2cb   :  { %1508 = vrot.lane.b32.xlu0 %v1507_v49, %s1541_s2  ;;  %v812_v57 = vsel %vm1789_vm10, %v804_v53, 0.0  ;;  %v798_v34 = vsel %vm2498_vm5, %v794_v14, %v795_v37  ;;  %v797_v51 = vsel %vm2499_vm4, %v795_v37, %v796_v41  ;;  %v774_v59 = vsel %vm2501_vm13, %v770_v32, %v771_v19  ;;  %vm2503_vm1 = vmmov %vm2500_vm9 }
 0x2cc   :  { %1334 = vmatprep.mubr.msk.f32.mxu1 %vm2500_vm9, %v812_v57  ;;  %v773_v44 = vsel %vm2502_vm6, %v771_v19, %v772_v47  ;;  %v781_v60 = vsel %vm1804_vm11, %v780_v55, 0.0  ;;  %vm2504_vm5 = vmmov %vm2503_vm1  ;;  %vm2508_vm6 = vnez %v2445_v36  ;;  %v810_v14 = vsel %vm1747_vm7, %v798_v34, 0.0 }
 0x2cd   :  { %vm2505_vm9 = vmmov %vm2503_vm1  ;;  %v808_v26 = vsel %vm2508_vm6, %v800_v38, 0.0  ;;  %v788_v24 = vsel %vm2517_vm0, %v773_v44, 0.0 }
 0x2ce   :  { %vm2506_vm13 = vmmov %vm2503_vm1 }
 0x2cf   :  { %vm2507_vm4 = vmmov %vm2503_vm1 }
 0x2d0   :  { %vm2515_vm12 = vmmov %vm2503_vm1 }
 0x2d1   :  { %vm2518_vm15 = vmmov %vm2503_vm1 }
 0x322   :  { %v824_v62 = vpop.permute.xlu1 %823 }
 0x323   :  { %v822_v33 = vpop.permute.xlu0 %821  ;;  %v846_v2 = vsel %vm2505_vm9, %v782_v0, %v824_v62  ;;  %vm2510_vm9 = vnez %v2447_v48 }
 0x324   :  { %v845_v61 = vsel %vm2503_vm1, %v781_v60, %v822_v33  ;;  %v809_v56 = vsel %vm2510_vm9, %v799_v39, 0.0 }
 0x325   :  { %973 = vmatmul.mubr.f32.vlgmr.msra.gmra.mrb[8].mxu0 %v845_v61 }
 0x326   :  { %1328 = vmatprep.mubr.msk.f32.mxu0 %vm2504_vm5, %v806_v63  ;;  %vm2509_vm5 = vmmov %vm2503_vm1 }
 0x329   :  { %978 = vmatmul.mubr.f32.gmra.mrb[10].mxu0 %v846_v2 }
 0x32a   :  { %1329 = vmatprep.mubr.msk.f32.mxu0 %vm2506_vm13, %v807_v6  ;;  %v828_v5 = vpop.permute.xlu1 %827  ;;  %vm2511_vm13 = vmmov %vm2503_vm1 }
 0x32b   :  { %v826_v10 = vpop.permute.xlu0 %825  ;;  %v848_v20 = vsel %vm2509_vm5, %v784_v50, %v828_v5  ;;  %vm2513_vm5 = vmmov %vm2503_vm1 }
 0x32c   :  { %v847_v17 = vsel %vm2507_vm4, %v783_v11, %v826_v10  ;;  %vm2512_vm4 = vmmov %vm2503_vm1 }
 0x32d   :  { %983 = vmatmul.mubr.f32.gmra.mrb[12].mxu0 %v847_v17 }
 0x32e   :  { %1330 = vmatprep.mubr.msk.f32.mxu0 %vm2503_vm1, %v808_v26 }
 0x331   :  { %988 = vmatmul.mubr.f32.gmra.mrb[14].mxu0 %v848_v20 }
 0x332   :  { %1331 = vmatprep.mubr.msk.f32.mxu0 %vm2511_vm13, %v809_v56  ;;  %v832_v32 = vpop.permute.xlu1 %831  ;;  %vm2514_vm13 = vnez %v2451_v9  ;;  %v1335_v9 = vld [vmem:[%s2410_s7] ss:$0 sm:$0xff]  ;;  %s1544_s7 = smov [#allocation3]  }
 0x333   :  { %v830_v22 = vpop.permute.xlu0 %829  ;;  %v850_v3 = vsel %vm2513_vm5, %v786_v1, %v832_v32  ;;  %v811_v21 = vsel %vm2514_vm13, %v797_v51, 0.0  ;;  %vm2521_vm5 = vnez %v2439_v18 }
 0x334   :  { %v849_v31 = vsel %vm2512_vm4, %v785_v12, %v830_v22  ;;  %vm2516_vm4 = vnez %v2467_v52 }
 0x335   :  { %993 = vmatmul.mubr.f32.gmra.mrb[16].mxu0 %v849_v31  ;;  %v787_v7 = vsel %vm2516_vm4, %v774_v59, 0.0 }
 0x336   :  { %1332 = vmatprep.mubr.msk.f32.mxu0 %vm2503_vm1, %v810_v14 }
 0x339   :  { %998 = vmatmul.mubr.f32.gmra.mrb[18].mxu0 %v850_v3 }
 0x33a   :  { %1333 = vmatprep.mubr.msk.f32.mxu0 %vm2515_vm12, %v811_v21  ;;  %vm2519_vm12 = vcmp.lt.s32.totalorder %v1625_v8, 7 }
 0x33d   :  { %v1509_v35 = vpop.permute.xlu0 %1508 }
 0x33e   :  { %v1511_v38 = vunpack.i.h.bf16 %v1509_v35  ;;  %v1510_v39 = vunpack.i.l.bf16 %v1509_v35 }
 0x340   :  { %v851_v42 = vsel %vm2503_vm1, %v787_v7, %v1510_v39  ;;  %v852_v40 = vsel %vm2518_vm15, %v788_v24, %v1511_v38  ;;  %vm2520_vm15 = vcmp.lt.s32.totalorder %v1625_v8, 1  ;;  %vm2522_vm1 = vmmov %vm2519_vm12 }
 0x341   :  { %1003 = vmatmul.mubr.f32.gmra.mrb[20].mxu0 %v851_v42  ;;  %1008 = vmatmul.mubr.f32.vlgmr.msra.gmra.mrb[8].mxu1 %v852_v40 }
 0x3f8   :  { %v974_v45 = vpop.f32.mrb[8].mxu0 }
 0x3f9   :  { %v975_v46 = vadd.f32 %v1326_v43, %v974_v45  ;;  %v976_v47 = vpop.f32.mrb[9].mxu0 }
 0x3fb   :  { %v2241_v41 = vmax.f32 %v975_v46, 0.0 }
 0x3fc   :  { %v979_v19 = vpop.f32.mrb[10].mxu0 }
 0x3fd   :  { %v980_v37 = vadd.f32 %v1326_v43, %v979_v19  ;;  %1077 = vrot.lane.b32.xlu1 %v2241_v41, %s1540_s30  ;;  %v981_v49 = vpop.f32.mrb[11].mxu0  ;;  %v1021_v55 = vrot.slane %v2241_v41, 7  ;;  %v1045_v34 = vrot.slane %v2241_v41, 1 }
 0x3ff   :  { %v1014_v53 = vmax.f32 %v980_v37, 0.0 }
 0x400   :  { %v984_v57 = vpop.f32.mrb[12].mxu0 }
 0x401   :  { %v1022_v51 = vrot.slane %v1014_v53, 7  ;;  %v1046_v59 = vrot.slane %v1014_v53, 1  ;;  %v985_v44 = vadd.f32 %v1326_v43, %v984_v57  ;;  %v986_v33 = vpop.f32.mrb[13].mxu0  ;;  %1079 = vrot.lane.b32.xlu0 %v1014_v53, %s1540_s30 }
 0x403   :  { %v1015_v60 = vmax.f32 %v985_v44, 0.0  ;;  %v1059_v61 = vsel %vm2519_vm12, %v1045_v34, %v1046_v59  ;;  %v2256_v62 = vsel %vm2520_vm15, %v1021_v55, %v1022_v51  ;;  %vm2523_vm12 = vmmov %vm2520_vm15 }
 0x404   :  { %v989_v63 = vpop.f32.mrb[14].mxu0  ;;  %v1061_v0 = vsel %vm2521_vm5, %v1059_v61, 0.0  ;;  %vm2524_vm15 = vmmov %vm2522_vm1  ;;  %v1038_v15 = vsel %vm1818_vm14, %v2256_v62, 0.0 }
 0x405   :  { %v1023_v2 = vrot.slane %v1015_v60, 7  ;;  %v1047_v6 = vrot.slane %v1015_v60, 1  ;;  %v990_v10 = vadd.f32 %v1326_v43, %v989_v63  ;;  %v991_v11 = vpop.f32.mrb[15].mxu0  ;;  %1081 = vrot.lane.b32.xlu1 %v1015_v60, %s1540_s30  ;;  %1109 = vrot.lane.b32.xlu0 %v1061_v0, %s1541_s2  ;;  %vm2525_vm5 = vmmov %vm2523_vm12 }
 0x407   :  { %v1016_v17 = vmax.f32 %v990_v10, 0.0  ;;  %v1058_v5 = vsel %vm2522_vm1, %v1046_v59, %v1047_v6  ;;  %v2266_v26 = vsel %vm2523_vm12, %v1022_v51, %v1023_v2 }
 0x408   :  { %v994_v50 = vpop.f32.mrb[16].mxu0  ;;  %v1062_v18 = vsel %vm1674_vm2, %v1058_v5, 0.0  ;;  %vm2526_vm2 = vmmov %vm2522_vm1 }
 0x409   :  { %v1024_v20 = vrot.slane %v1016_v17, 7  ;;  %v1048_v56 = vrot.slane %v1016_v17, 1  ;;  %v995_v22 = vadd.f32 %v1326_v43, %v994_v50  ;;  %v996_v12 = vpop.f32.mrb[17].mxu0  ;;  %1111 = vrot.lane.b32.xlu1 %v1062_v18, %s1541_s2  ;;  %vm2527_vm1 = vmmov %vm2525_vm5 }
 0x40a   :  { %vm2529_vm12 = vmmov %vm2527_vm1 }
 0x40b   :  { %v1017_v31 = vmax.f32 %v995_v22, 0.0  ;;  %v1057_v32 = vsel %vm2524_vm15, %v1047_v6, %v1048_v56  ;;  %v2275_v14 = vsel %vm2525_vm5, %v1023_v2, %v1024_v20  ;;  %vm2531_vm15 = vmmov %vm2526_vm2 }
 0x40c   :  { %v999_v1 = vpop.f32.mrb[18].mxu0  ;;  %v1063_v3 = vsel %vm1680_vm3, %v1057_v32, 0.0  ;;  %vm2528_vm3 = vmmov %vm2526_vm2  ;;  %v1039_v32 = vsel %vm2484_vm8, %v2266_v26, 0.0  ;;  %vm2544_vm8 = vnez %v2461_v13 }
 0x40d   :  { %v1025_v27 = vrot.slane %v1017_v31, 7  ;;  %v1049_v21 = vrot.slane %v1017_v31, 1  ;;  %v1000_v35 = vadd.f32 %v1326_v43, %v999_v1  ;;  %v1001_v38 = vpop.f32.mrb[19].mxu0  ;;  %1113 = vrot.lane.b32.xlu1 %v1063_v3, %s1541_s2  ;;  %vm2533_vm5 = vmmov %vm2527_vm1  ;;  %v1040_v29 = vsel %vm2544_vm8, %v2275_v14, 0.0 }
 0x40e   :  { %v1543_v38 = vmov 0  }
 0x40f   :  { %v1018_v39 = vmax.f32 %v1000_v35, 0.0  ;;  %v1056_v7 = vsel %vm2526_vm2, %v1048_v56, %v1049_v21  ;;  %v2284_v24 = vsel %vm2527_vm1, %v1024_v20, %v1025_v27  ;;  %1512 = vset.pattern.permute.xlu0 %v1543_v38  ;;  %1513 = vset.pattern.permute.xlu1 %v1543_v38 }
 0x410   :  { %v1064_v42 = vsel %vm2508_vm6, %v1056_v7, 0.0  ;;  %vm2530_vm6 = vmmov %vm2526_vm2 }
 0x411   :  { %v1026_v40 = vrot.slane %v1018_v39, 7  ;;  %v1050_v28 = vrot.slane %v1018_v39, 1  ;;  %1115 = vrot.lane.b32.xlu1 %v1064_v42, %s1541_s2 }
 0x413   :  { %v1055_v45 = vsel %vm2528_vm3, %v1049_v21, %v1050_v28  ;;  %v2293_v46 = vsel %vm2529_vm12, %v1025_v27, %v1026_v40  ;;  %vm2538_vm3 = vcmask 785408  }
 0x414   :  { %v1004_v47 = vpop.f32.mrb[20].mxu0  ;;  %v1009_v19 = vpop.f32.mrb[8].mxu1  ;;  %v1065_v37 = vsel %vm2510_vm9, %v1055_v45, 0.0  ;;  %vm2532_vm9 = vmmov %vm2526_vm2 }
 0x415   :  { %v1005_v49 = vadd.f32 %v1326_v43, %v1004_v47  ;;  %v1010_v53 = vadd.f32 %v1326_v43, %v1009_v19  ;;  %v1006_v36 = vpop.f32.mrb[21].mxu0  ;;  %v1011_v57 = vpop.f32.mrb[9].mxu1  ;;  %1117 = vrot.lane.b32.xlu1 %v1065_v37, %s1541_s2  ;;  %vm2534_vm2 = vmmov %vm2527_vm1 }
 0x416   :  { %vm2543_vm14 = vmmov %vm2538_vm3 }
 0x417   :  { %v1019_v51 = vmax.f32 %v1005_v49, 0.0  ;;  %v1020_v59 = vmax.f32 %v1010_v53, 0.0 }
 0x419   :  { %v1027_v44 = vrot.slane %v1019_v51, 7  ;;  %v1051_v33 = vrot.slane %v1019_v51, 1  ;;  %v1028_v60 = vrot.slane %v1020_v59, 7  ;;  %v1052_v61 = vrot.slane %v1020_v59, 1  ;;  %1091 = vrot.lane.b32.xlu0 %v1020_v59, %s1540_s30 }
 0x41b   :  { %v1054_v63 = vsel %vm2530_vm6, %v1050_v28, %v1051_v33  ;;  %v1053_v48 = vsel %vm2531_vm15, %v1051_v33, %v1052_v61  ;;  %v1060_v43 = vsel %vm2532_vm9, %v1052_v61, %v1045_v34  ;;  %v1036_v0 = vsel %vm2533_vm5, %v1028_v60, %v1021_v55  ;;  %vm2541_vm6 = vmmov %vm2538_vm3 }
 0x41c   :  { %v1066_v2 = vsel %vm1747_vm7, %v1054_v63, 0.0  ;;  %v2317_v6 = vsel %vm2534_vm2, %v1027_v44, %v1028_v60  ;;  %v2321_v10 = vsel %vm2527_vm1, %v1026_v40, %v1027_v44  ;;  %v1067_v41 = vsel %vm2514_vm13, %v1053_v48, 0.0 }
 0x41d   :  { %1083 = vrot.lane.b32.xlu0 %v1016_v17, %s1540_s30  ;;  %1119 = vrot.lane.b32.xlu1 %v1066_v2, %s1541_s2  ;;  %v1068_v54 = vsel %vm1789_vm10, %v1060_v43, 0.0  ;;  %v1037_v11 = vsel %vm1804_vm11, %v1036_v0, 0.0  ;;  %vm2535_vm7 = vcmask 261120   ;;  %vm2536_vm13 = vcmask 523264  }
 0x41e   :  { %vm2537_vm10 = vmmov %vm2535_vm7  ;;  %vm2547_vm2 = vnez %v2463_v16  ;;  %v1043_v59 = vsel %vm2516_vm4, %v2321_v10, 0.0  ;;  %v1044_v61 = vsel %vm2517_vm0, %v2317_v6, 0.0  ;;  %vm1246_vm0 = vcmask 130112  }
 0x41f   :  { %vm2539_vm11 = vmmov %vm2536_vm13  ;;  %v1041_v45 = vsel %vm2547_vm2, %v2284_v24, 0.0  ;;  %vm1253_vm2 = vcmask 195712  }
 0x420   :  { %vm2540_vm12 = vmmov %vm2535_vm7 }
 0x421   :  { %1085 = vrot.lane.b32.xlu0 %v1017_v31, %s1540_s30  ;;  %1121 = vrot.lane.b32.xlu1 %v1067_v41, %s1541_s2  ;;  %vm2542_vm15 = vmmov %vm2539_vm11  ;;  %v1336_v41 = vld [vmem:[#allocation2] ss:$0 sm:$0xff] }
 0x422   :  { %vm2545_vm9 = vmmov %vm2535_vm7 }
 0x423   :  { %vm2546_vm5 = vmmov %vm2539_vm11 }
 0x424   :  { %vm2548_vm1 = vmmov %vm2535_vm7 }
 0x425   :  { %1087 = vrot.lane.b32.xlu0 %v1018_v39, %s1540_s30  ;;  %vm2558_vm8 = vmmov %vm2548_vm1 }
 0x429   :  { %1089 = vrot.lane.b32.xlu0 %v1019_v51, %s1540_s30  ;;  %s1299_s30 = sshll.u32 %s1544_s7, 4  ;;  %s1300_s30 = int_to_ptr.vmem [resolvable:$true] %s1299_s30 }
 0x42a   :  { %s1518_s12 = scalar_lea.vmem %s1300_s30, 32  ;;  %p1519_p1 = scmp.lt.s32.totalorder %s1300_s30, %s1300_s30 }
 0x42d   :  { %1123 = vrot.lane.b32.xlu0 %v1068_v54, %s1541_s2  ;;  %s1514_s2 = scalar_lea.vmem %s1300_s30, 16 }
 0x42e   :  { %p1515_p0 = scmp.ne.s32.totalorder %s1300_s30, %s1514_s2  ;;  %p1520_p2 = scmp.lt.s32.totalorder %s1518_s12, %s1514_s2 }
 0x430   :  { %p1521_p3 = por %p1520_p2, %p1519_p1 }
 0x432   :  { %p1522_p4 = pnand %p1521_p3, %p1515_p0 }
 0x46f   :  { %v1078_v55 = vpop.permute.xlu1 %1077 }
 0x470   :  { %v1133_v17 = vsel %vm2535_vm7, %v1037_v11, %v1078_v55  ;;  %vm2549_vm7 = vmmov %vm2538_vm3 }
 0x471   :  { %vm2560_vm4 = vmmov %vm2549_vm7 }
 0x473   :  { %v1080_v34 = vpop.permute.xlu0 %1079 }
 0x474   :  { %v1134_v56 = vsel %vm2537_vm10, %v1038_v15, %v1080_v34  ;;  %vm2551_vm10 = vnez %v2465_v25 }
 0x475   :  { %v1042_v53 = vsel %vm2551_vm10, %v2293_v46, 0.0  ;;  %vm1281_vm10 = vcmask 458112  }
 0x477   :  { %v1082_v5 = vpop.permute.xlu1 %1081  ;;  %v1110_v50 = vpop.permute.xlu0 %1109 }
 0x478   :  { %v1141_v18 = vsel %vm2536_vm13, %v1133_v17, %v1110_v50  ;;  %v1135_v1 = vsel %vm2540_vm12, %v1039_v32, %v1082_v5  ;;  %vm2550_vm13 = vmmov %vm2546_vm5  ;;  %v1236_v32 = vand.u32 127, %v35_v4 }
 0x479   :  { %v1156_v20 = vmul.f32 %v1335_v9, %v1141_v18  ;;  %vm2554_vm12 = vmmov %vm2546_vm5 }
 0x47a   :  { %v1269_v38 = vadd.s32 4294967256, %v1236_v32 }
 0x47b   :  { %v1112_v22 = vpop.permute.xlu1 %1111  ;;  %v1164_v23 = vsel %vm2538_vm3, %v1156_v20, 0.0  ;;  %vm2552_vm3 = vmmov %vm2548_vm1 }
 0x47c   :  { %v1142_v12 = vsel %vm2539_vm11, %v1134_v56, %v1112_v22  ;;  %1165 = vadd.xlane.f32.xlu1 %v1164_v23  ;;  %vm2553_vm11 = vmmov %vm2541_vm6 }
 0x47d   :  { %v1157_v31 = vmul.f32 %v1335_v9, %v1142_v12 }
 0x47f   :  { %v1114_v3 = vpop.permute.xlu1 %1113  ;;  %v1167_v27 = vsel %vm2541_vm6, %v1157_v31, 0.0  ;;  %vm2555_vm6 = vmmov %vm2548_vm1 }
 0x480   :  { %v1143_v30 = vsel %vm2542_vm15, %v1135_v1, %v1114_v3  ;;  %1168 = vadd.xlane.f32.xlu0 %v1167_v27  ;;  %vm2556_vm15 = vmmov %vm2549_vm7  ;;  %v1241_v3 = vadd.s32 4294967288, %v1236_v32  ;;  %v1248_v27 = vadd.s32 4294967280, %v1236_v32 }
 0x481   :  { %v1158_v62 = vmul.f32 %v1335_v9, %v1143_v30  ;;  %v1255_v30 = vadd.s32 4294967272, %v1236_v32 }
 0x483   :  { %v1170_v21 = vsel %vm2543_vm14, %v1158_v62, 0.0  ;;  %v1116_v39 = vpop.permute.xlu1 %1115  ;;  %vm2557_vm14 = vmmov %vm2546_vm5  ;;  %v1262_v62 = vadd.s32 4294967264, %v1236_v32 }
 0x484   :  { %1171 = vadd.xlane.f32.xlu0 %v1170_v21 }
 0x487   :  { %v1118_v40 = vpop.permute.xlu1 %1117 }
 0x48b   :  { %v1092_v35 = vpop.permute.xlu0 %1091 }
 0x48c   :  { %v1140_v48 = vsel %vm2558_vm8, %v1044_v61, %v1092_v35  ;;  %v1244_v35 = vsub.s32 %v1241_v3, %v1625_v8 }
 0x48f   :  { %v1084_v26 = vpop.permute.xlu0 %1083  ;;  %v1120_v14 = vpop.permute.xlu1 %1119 }
 0x490   :  { %v1136_v7 = vsel %vm2545_vm9, %v1040_v29, %v1084_v26  ;;  %vm2559_vm9 = vmmov %vm2546_vm5  ;;  %v1276_v29 = vadd.s32 4294967248, %v1236_v32  ;;  %v1239_v26 = vsub.s32 %v1236_v32, %v1625_v8 }
 0x491   :  { %v1144_v42 = vsel %vm2546_vm5, %v1136_v7, %v1116_v39  ;;  %vm2561_vm5 = vmmov %vm2560_vm4  ;;  %v1251_v39 = vsub.s32 %v1248_v27, %v1625_v8  ;;  %v1258_v7 = vsub.s32 %v1255_v30, %v1625_v8 }
 0x492   :  { %v1159_v28 = vmul.f32 %v1335_v9, %v1144_v42 }
 0x493   :  { %v1086_v47 = vpop.permute.xlu0 %1085  ;;  %v1122_v33 = vpop.permute.xlu1 %1121 }
 0x494   :  { %v1137_v19 = vsel %vm2548_vm1, %v1041_v45, %v1086_v47  ;;  %v1173_v37 = vsel %vm2549_vm7, %v1159_v28, 0.0  ;;  %v1272_v45 = vsub.s32 %v1269_v38, %v1625_v8  ;;  %v1283_v47 = vadd.s32 4294967240, %v1236_v32 }
 0x495   :  { %1174 = vadd.xlane.f32.xlu1 %v1173_v37  ;;  %v1145_v13 = vsel %vm2550_vm13, %v1137_v19, %v1118_v40  ;;  %v1265_v40 = vsub.s32 %v1262_v62, %v1625_v8  ;;  %v1279_v37 = vsub.s32 %v1276_v29, %v1625_v8  ;;  %vm1260_vm1 = vcmask 261312  }
 0x496   :  { %v1160_v49 = vmul.f32 %v1335_v9, %v1145_v13  ;;  %vm1267_vm7 = vcmask 326912   ;;  %vm1274_vm13 = vcmask 392512  }
 0x497   :  { %v1088_v36 = vpop.permute.xlu0 %1087 }
 0x498   :  { %v1138_v57 = vsel %vm2552_vm3, %v1042_v53, %v1088_v36  ;;  %v1176_v16 = vsel %vm2553_vm11, %v1160_v49, 0.0  ;;  %vm1288_vm3 = vcmask 523712   ;;  %vm1291_vm11 = vcmask 516096  }
 0x499   :  { %1177 = vadd.xlane.f32.xlu0 %v1176_v16  ;;  %v1146_v24 = vsel %vm2554_vm12, %v1138_v57, %v1120_v14  ;;  %v1286_v16 = vsub.s32 %v1283_v47, %v1625_v8 }
 0x49a   :  { %v1161_v51 = vmul.f32 %v1335_v9, %v1146_v24 }
 0x49b   :  { %v1090_v44 = vpop.permute.xlu0 %1089 }
 0x49c   :  { %v1139_v60 = vsel %vm2555_vm6, %v1043_v59, %v1090_v44  ;;  %v1179_v25 = vsel %vm2556_vm15, %v1161_v51, 0.0 }
 0x49d   :  { %1180 = vadd.xlane.f32.xlu1 %v1179_v25  ;;  %v1147_v46 = vsel %vm2557_vm14, %v1139_v60, %v1122_v33 }
 0x49e   :  { %v1162_v63 = vmul.f32 %v1335_v9, %v1147_v46 }
 0x49f   :  { %v1124_v43 = vpop.permute.xlu0 %1123 }
 0x4a0   :  { %v1148_v52 = vsel %vm2559_vm9, %v1140_v48, %v1124_v43  ;;  %v1182_v0 = vsel %vm2560_vm4, %v1162_v63, 0.0 }
 0x4a1   :  { %1183 = vadd.xlane.f32.xlu0 %v1182_v0  ;;  %v1163_v2 = vmul.f32 %v1335_v9, %v1148_v52 }
 0x4a3   :  { %v1185_v10 = vsel %vm2561_vm5, %v1163_v2, 0.0 }
 0x4a4   :  { %1186 = vadd.xlane.f32.xlu1 %v1185_v10 }
 0x509   :  { %v1166_v54 = vpop.xlane.xlu1 %1165 }
 0x50a   :  { %v1195_v55 = vadd.f32 %v1336_v41, %v1166_v54 }
 0x50c   :  { %1212 = vperm.xlu0 %1512, %v1195_v55  }
 0x50d   :  { %v1169_v34 = vpop.xlane.xlu0 %1168 }
 0x50e   :  { %v1196_v58 = vadd.f32 %v1336_v41, %v1169_v34 }
 0x510   :  { %1215 = vperm.xlu1 %1513, %v1196_v58  }
 0x511   :  { %v1172_v6 = vpop.xlane.xlu0 %1171 }
 0x512   :  { %v1197_v11 = vadd.f32 %v1336_v41, %v1172_v6 }
 0x514   :  { %1218 = vperm.xlu1 %1513, %v1197_v11  }
 0x522   :  { %v1175_v17 = vpop.xlane.xlu1 %1174 }
 0x523   :  { %v1198_v5 = vadd.f32 %v1336_v41, %v1175_v17 }
 0x525   :  { %1221 = vperm.xlu1 %1513, %v1198_v5  }
 0x526   :  { %v1178_v50 = vpop.xlane.xlu0 %1177 }
 0x527   :  { %v1199_v18 = vadd.f32 %v1336_v41, %v1178_v50 }
 0x529   :  { %1224 = vperm.xlu1 %1513, %v1199_v18  }
 0x52a   :  { %v1181_v9 = vpop.xlane.xlu1 %1180 }
 0x52b   :  { %v1200_v20 = vadd.f32 %v1336_v41, %v1181_v9 }
 0x52d   :  { %1227 = vperm.xlu1 %1513, %v1200_v20  }
 0x52e   :  { %v1184_v15 = vpop.xlane.xlu0 %1183 }
 0x52f   :  { %v1201_v56 = vadd.f32 %v1336_v41, %v1184_v15 }
 0x531   :  { %v1187_v22 = vpop.xlane.xlu1 %1186  ;;  %1230 = vperm.xlu1 %1513, %v1201_v56  }
 0x532   :  { %v1202_v23 = vadd.f32 %v1336_v41, %v1187_v22 }
 0x535   :  { %1233 = vperm.xlu1 %1513, %v1202_v23  }
 0x58b   :  { %v1213_v42 = vpop.permute.xlu0 %1212 }
 0x58c   :  { %v1240_v13 = vrot.slane %v1213_v42, %v1239_v26 }
 0x58f   :  { %v1216_v12 = vpop.permute.xlu1 %1215 }
 0x590   :  { %v1245_v28 = vrot.slane %v1216_v12, %v1244_v35 }
 0x592   :  { %v1247_v36 = vsel %vm1246_vm0, %v1245_v28, %v1240_v13 }
 0x593   :  { %v1219_v31 = vpop.permute.xlu1 %1218 }
 0x594   :  { %v1252_v19 = vrot.slane %v1219_v31, %v1251_v39 }
 0x596   :  { %v1254_v24 = vsel %vm1253_vm2, %v1252_v19, %v1247_v36 }
 0x5a4   :  { %v1222_v1 = vpop.permute.xlu1 %1221 }
 0x5a5   :  { %v1259_v14 = vrot.slane %v1222_v1, %v1258_v7 }
 0x5a7   :  { %v1261_v59 = vsel %vm1260_vm1, %v1259_v14, %v1254_v24 }
 0x5a8   :  { %v1225_v21 = vpop.permute.xlu1 %1224 }
 0x5a9   :  { %v1266_v49 = vrot.slane %v1225_v21, %v1265_v40 }
 0x5ab   :  { %v1268_v44 = vsel %vm1267_vm7, %v1266_v49, %v1261_v59 }
 0x5ac   :  { %v1228_v4 = vpop.permute.xlu1 %1227 }
 0x5ad   :  { %v1273_v57 = vrot.slane %v1228_v4, %v1272_v45 }
 0x5af   :  { %v1275_v60 = vsel %vm1274_vm13, %v1273_v57, %v1268_v44 }
 0x5b0   :  { %v1231_v53 = vpop.permute.xlu1 %1230 }
 0x5b1   :  { %v1280_v51 = vrot.slane %v1231_v53, %v1279_v37 }
 0x5b3   :  { %v1282_v46 = vsel %vm1281_vm10, %v1280_v51, %v1275_v60 }
 0x5b4   :  { %v1234_v33 = vpop.permute.xlu1 %1233 }
 0x5b5   :  { %v1287_v25 = vrot.slane %v1234_v33, %v1286_v16 }
 0x5b7   :  { %v1289_v61 = vsel %vm1288_vm3, %v1287_v25, %v1282_v46 }
 0x5b8   :  { %1292 = vst.msk [vmem:[#allocation3] sm:$0x1] %vm1291_vm11, %v1289_v61 }
 0x5b9   :  { %1525 = shalt.err (!%p1522_p4)
}
 0x5ba   :  { %s1526_s15 = scalar_lea.hbm %s2412_s9, 16 }
 0x5bb   :  { %p1527_p5 = scmp.ne.s32.totalorder %s2412_s9, %s1526_s15  ;;  %p1530_p6 = scmp.lt.u32.totalorder %s1526_s15, %s2412_s9 }
 0x5bd   :  { %p1532_p7 = pnand %p1530_p6, %p1527_p5 }
 0x5bf   :  { %1535 = shalt.err (!%p1532_p7)
}
 0x5c0   :  { %1302 = dma.vmem_to_hbm [thread:$0]  %s1300_s30, 16, %s2412_s9, [#allocation4]  }
 0x5c1   :  { %1536 = dma.done.wait [#allocation4], 16  }
 0x5c2   :  { %1537 = vsyncadd [#allocation4], 4294967280 }
 0x5c3   :  { %1306 = vsyncpa [#allocation4], 1 }

</bundles_post_ra>
